<compile_context>
chip_gen: v5e
topology: v5e:2x2
jax: 0.10.0
libtpu: 0.0.40
codegen_flags: <defaults>
</compile_context>

<pallas_src>
import functools
import math

import jax
import jax.numpy as jnp
from jax.experimental import pallas as pl
from jax.experimental.pallas import tpu as pltpu

_VMEM_LIMIT = 64 * 1024 * 1024


def _pick_nb(n):
    """Number of MHA-batch rows processed per grid step (must divide n)."""
    for cand in (16, 8, 4, 2):
        if n % cand == 0:
            return cand
    return 1


def _pick_row_tile(rows, max_rows=256):
    """Row-tile for the tail kernel: divides `rows`, multiple of 8 (or full)."""
    if rows <= max_rows:
        return rows
    for t in range(max_rows, 7, -1):
        if rows % t == 0 and t % 8 == 0:
            return t
    return rows  # fallback: single tile (correct, just larger VMEM footprint)


# ----------------------------------------------------------------------------
# Kernel 1: multi-head self-attention on `nb` independent MHA-batch rows.
#   x_ref leading dims flatten to (nb, L); last dim is d (embed, lane axis).
#   w_in_ref: (d, 3d) pre-transposed bf16;  w_out_ref: (d, d) pre-transposed bf16.
# ----------------------------------------------------------------------------
def _mha_block_kernel(x_ref, w_in_ref, b_in_ref, w_out_ref, b_out_ref, o_ref,
                      *, num_heads, nb):
    d = x_ref.shape[-1]
    tokens = math.prod(x_ref.shape[:-1])
    L = tokens // nb
    hd = d // num_heads
    scale = 1.0 / math.sqrt(hd)

    # One batched QKV projection for all nb*L tokens (MXU, bf16 -> f32).
    x2d = x_ref[...].reshape(tokens, d).astype(jnp.bfloat16)
    qkv = jnp.dot(x2d, w_in_ref[...],
                  preferred_element_type=jnp.float32) + b_in_ref[...]
    qkv = qkv.reshape(nb, L, 3 * d)

    heads = []
    for h in range(num_heads):                       # static, small head count
        q = (qkv[:, :, h * hd:(h + 1) * hd] * scale).astype(jnp.bfloat16)
        k = qkv[:, :, d + h * hd:d + (h + 1) * hd].astype(jnp.bfloat16)
        v = qkv[:, :, 2 * d + h * hd:2 * d + (h + 1) * hd].astype(jnp.bfloat16)
        # scores: batched over nb, contract over hd (NT form, no transpose)
        s = jax.lax.dot_general(q, k, (((2,), (2,)), ((0,), (0,))),
                                preferred_element_type=jnp.float32)  # (nb,L,L)
        s = s - jnp.max(s, axis=-1, keepdims=True)
        p = jnp.exp(s)
        p = p * pl.reciprocal(jnp.sum(p, axis=-1, keepdims=True), approx=True)
        o_h = jax.lax.dot_general(p.astype(jnp.bfloat16), v,
                                  (((2,), (1,)), ((0,), (0,))),
                                  preferred_element_type=jnp.float32)  # (nb,L,hd)
        heads.append(o_h)

    # Concatenate heads along lanes, then ONE full-K (K = d) out-projection.
    attn = jnp.concatenate(heads, axis=-1).reshape(tokens, d)
    out = jnp.dot(attn.astype(jnp.bfloat16), w_out_ref[...],
                  preferred_element_type=jnp.float32) + b_out_ref[...]
    o_ref[...] = out.reshape(o_ref.shape).astype(o_ref.dtype)


def _prep_mha_params(w_in, b_in, w_out, b_out):
    """Pre-transpose weights to (in, out) layout and cast to bf16."""
    return (jnp.transpose(w_in).astype(jnp.bfloat16),    # (d, 3d)
            b_in.reshape(1, -1).astype(jnp.float32),      # (1, 3d)
            jnp.transpose(w_out).astype(jnp.bfloat16),    # (d, d)
            b_out.reshape(1, -1).astype(jnp.float32))     # (1, d)


def _mha_weight_specs(d):
    return [
        pl.BlockSpec((d, 3 * d), lambda i: (0, 0)),
        pl.BlockSpec((1, 3 * d), lambda i: (0, 0)),
        pl.BlockSpec((d, d), lambda i: (0, 0)),
        pl.BlockSpec((1, d), lambda i: (0, 0)),
    ]


def mha_spatial_pallas(x, w_in, b_in, w_out, b_out, num_heads):
    """Spatial branch: seq = B*nt, MHA-batch = nv.  Returns x_s (B, nt*nv, d) bf16."""
    B, nt, nv, d = x.shape
    L = B * nt
    nb = _pick_nb(nv)
    w_in_t, b_in2, w_out_t, b_out2 = _prep_mha_params(w_in, b_in, w_out, b_out)
    # nv is the 2nd-to-last axis of x, so one batch-major transpose is needed;
    # fuse the bf16 cast into it (halves the HBM traffic of the copy).
    xs = jnp.transpose(x.reshape(L, nv, d), (1, 0, 2)).astype(jnp.bfloat16)
    kernel = functools.partial(_mha_block_kernel, num_heads=num_heads, nb=nb)
    out = pl.pallas_call(
        kernel,
        out_shape=jax.ShapeDtypeStruct((nv, L, d), jnp.bfloat16),
        grid=(nv // nb,),
        in_specs=[pl.BlockSpec((nb, L, d), lambda i: (i, 0, 0))]
        + _mha_weight_specs(d),
        out_specs=pl.BlockSpec((nb, L, d), lambda i: (i, 0, 0)),
        compiler_params=pltpu.CompilerParams(
            dimension_semantics=("parallel",),
            vmem_limit_bytes=_VMEM_LIMIT),
    )(xs, w_in_t, b_in2, w_out_t, b_out2)
    return jnp.transpose(out, (1, 0, 2)).reshape(B, nt * nv, d)


def mha_temporal_pallas(x, w_in, b_in, w_out, b_out, num_heads):
    """Temporal branch: seq = B*nv, MHA-batch = nt.

    Reads x (B, nt, nv, d) directly through a squeezed 4-D BlockSpec and writes
    x_t straight into the final (B, nt, nv, d) layout (no HBM transposes).
    """
    B, nt, nv, d = x.shape
    w_in_t, b_in2, w_out_t, b_out2 = _prep_mha_params(w_in, b_in, w_out, b_out)
    kernel = functools.partial(_mha_block_kernel, num_heads=num_heads, nb=1)
    out = pl.pallas_call(
        kernel,
        out_shape=jax.ShapeDtypeStruct((B, nt, nv, d), jnp.bfloat16),
        grid=(nt,),
        in_specs=[pl.BlockSpec((B, None, nv, d), lambda i: (0, i, 0, 0))]
        + _mha_weight_specs(d),
        out_specs=pl.BlockSpec((B, None, nv, d), lambda i: (0, i, 0, 0)),
        compiler_params=pltpu.CompilerParams(
            dimension_semantics=("parallel",),
            vmem_limit_bytes=_VMEM_LIMIT),
    )(x, w_in_t, b_in2, w_out_t, b_out2)
    return out.reshape(B, nt * nv, d)


# ----------------------------------------------------------------------------
# Kernel 2: fused sublin + LayerNorm1 + FFN + residual + LayerNorm2.
#   All ops are purely row-wise, so tokens are flattened to (R, d) and the
#   grid tiles the row axis -> VMEM use is bounded at real ViViT sizes.
#   cat([x_s, x_t], -1) @ W_sub.T is computed as x_s @ Ws + x_t @ Wt with
#   pre-split / pre-transposed weights.
# ----------------------------------------------------------------------------
def _encoder_tail_kernel(xs_ref, xt_ref, x3_ref,
                         ws_s_ref, ws_t_ref, bsub_ref,
                         g1_ref, be1_ref,
                         w1_ref, b1_ref, w2_ref, b2_ref,
                         g2_ref, be2_ref, o_ref):
    eps = 1e-5
    xs = xs_ref[...]                                 # (tR, d) bf16
    xt = xt_ref[...]                                 # (tR, d) bf16
    x3 = x3_ref[...]                                 # (tR, d) f32

    x2 = (jnp.dot(xs, ws_s_ref[...], preferred_element_type=jnp.float32)
          + jnp.dot(xt, ws_t_ref[...], preferred_element_type=jnp.float32)
          + bsub_ref[...])

    mu = jnp.mean(x2, axis=-1, keepdims=True)
    var = jnp.mean((x2 - mu) ** 2, axis=-1, keepdims=True)
    x2 = (x2 - mu) * jax.lax.rsqrt(var + eps) * g1_ref[...] + be1_ref[...]

    h = jnp.maximum(
        jnp.dot(x2.astype(jnp.bfloat16), w1_ref[...],
                preferred_element_type=jnp.float32) + b1_ref[...], 0.0)
    y = (jnp.dot(h.astype(jnp.bfloat16), w2_ref[...],
                 preferred_element_type=jnp.float32) + b2_ref[...])

    y = x3 + y
    mu2 = jnp.mean(y, axis=-1, keepdims=True)
    var2 = jnp.mean((y - mu2) ** 2, axis=-1, keepdims=True)
    y = (y - mu2) * jax.lax.rsqrt(var2 + eps) * g2_ref[...] + be2_ref[...]
    o_ref[...] = y.astype(o_ref.dtype)


def encoder_tail_pallas(x_s, x_t, x_3d, p):
    B, T, d = x_3d.shape
    ff = p["w1"].shape[0]
    R = B * T
    tR = _pick_row_tile(R)
    ws_s = jnp.transpose(p["sub_w"][:, :d]).astype(jnp.bfloat16)   # (d, d)
    ws_t = jnp.transpose(p["sub_w"][:, d:]).astype(jnp.bfloat16)   # (d, d)
    w1_t = jnp.transpose(p["w1"]).astype(jnp.bfloat16)             # (d, ff)
    w2_t = jnp.transpose(p["w2"]).astype(jnp.bfloat16)             # (ff, d)

    def full2d(r, c):
        return pl.BlockSpec((r, c), lambda i: (0, 0))

    def tok():
        return pl.BlockSpec((tR, d), lambda i: (i, 0))

    in_specs = [
        tok(), tok(), tok(),
        full2d(d, d), full2d(d, d), full2d(1, d),
        full2d(1, d), full2d(1, d),
        full2d(d, ff), full2d(1, ff),
        full2d(ff, d), full2d(1, d),
        full2d(1, d), full2d(1, d),
    ]
    out = pl.pallas_call(
        _encoder_tail_kernel,
        out_shape=jax.ShapeDtypeStruct((R, d), jnp.float32),
        grid=(R // tR,),
        in_specs=in_specs,
        out_specs=pl.BlockSpec((tR, d), lambda i: (i, 0)),
        compiler_params=pltpu.CompilerParams(
            dimension_semantics=("parallel",),
            vmem_limit_bytes=_VMEM_LIMIT),
    )(x_s.reshape(R, d), x_t.reshape(R, d), x_3d.reshape(R, d),
      ws_s, ws_t, p["sub_b"].reshape(1, d),
      p["ln1_g"].reshape(1, d), p["ln1_b"].reshape(1, d),
      w1_t, p["b1"].reshape(1, ff),
      w2_t, p["b2"].reshape(1, d),
      p["ln2_g"].reshape(1, d), p["ln2_b"].reshape(1, d))
    return out.reshape(B, T, d)


# ----------------------------------------------------------------------------
# Full forward (Pallas).
# ----------------------------------------------------------------------------
def factorized_forward_pallas(x, p, nhead):
    B, nt, nv, d = x.shape
    shead = thead = nhead // 2
    assert shead >= 1 and d % shead == 0 and d % thead == 0
    x_3d = x.reshape(B, nt * nv, d)

    x_s = mha_spatial_pallas(x, p["s_w_in"], p["s_b_in"],
                             p["s_w_out"], p["s_b_out"], shead)
    x_t = mha_temporal_pallas(x, p["t_w_in"], p["t_b_in"],
                              p["t_w_out"], p["t_b_out"], thead)

    out = encoder_tail_pallas(x_s, x_t, x_3d, p)
    return out.reshape(B, nt, nv, d)


# ----------------------------------------------------------------------------
# References.
#  1) pure-f32 reference (exact PyTorch semantics)  -> loose sanity check
#  2) matched-precision reference (same bf16 casts) -> tight check
# ----------------------------------------------------------------------------
def _layernorm_ref(x, g, b, eps=1e-5):
    mu = jnp.mean(x, axis=-1, keepdims=True)
    var = jnp.mean((x - mu) ** 2, axis=-1, keepdims=True)
    return (x - mu) * jax.lax.rsqrt(var + eps) * g + b


def _mha_ref(x_lnd, w_in, b_in, w_out, b_out, num_heads):
    L, N, d = x_lnd.shape
    hd = d // num_heads
    qkv = jnp.einsum("lnd,ed->lne", x_lnd, w_in) + b_in
    q, k, v = qkv[..., :d], qkv[..., d:2 * d], qkv[..., 2 * d:]

    def split(t):
        return t.reshape(L, N, num_heads, hd).transpose(1, 2, 0, 3)

    q, k, v = split(q), split(k), split(v)
    s = jnp.einsum("nhld,nhmd->nhlm", q, k) / jnp.sqrt(jnp.float32(hd))
    s = s - jnp.max(s, axis=-1, keepdims=True)
    pw = jnp.exp(s)
    pw = pw / jnp.sum(pw, axis=-1, keepdims=True)
    o = jnp.einsum("nhlm,nhmd->nhld", pw, v)
    o = o.transpose(2, 0, 1, 3).reshape(L, N, d)
    return o @ w_out.T + b_out


def factorized_forward_ref(x, p, nhead):
    B, nt, nv, d = x.shape
    shead = thead = nhead // 2
    x_3d = x.reshape(B, nt * nv, d)
    xs = x.reshape(B * nt, nv, d)
    xt = jnp.transpose(x, (0, 2, 1, 3)).reshape(B * nv, nt, d)
    x_s = _mha_ref(xs, p["s_w_in"], p["s_b_in"], p["s_w_out"], p["s_b_out"],
                   shead).reshape(B, nt * nv, d)
    x_t = _mha_ref(xt, p["t_w_in"], p["t_b_in"], p["t_w_out"], p["t_b_out"],
                   thead)
    x_t = x_t.reshape(B, nv, nt, d).transpose(0, 2, 1, 3).reshape(B, nt * nv, d)
    x2 = jnp.concatenate([x_s, x_t], axis=-1) @ p["sub_w"].T + p["sub_b"]
    x2 = _layernorm_ref(x2, p["ln1_g"], p["ln1_b"])
    y = jnp.maximum(x2 @ p["w1"].T + p["b1"], 0.0) @ p["w2"].T + p["b2"]
    y = x_3d + y
    y = _layernorm_ref(y, p["ln2_g"], p["ln2_b"])
    return y.reshape(B, nt, nv, d)


def _mha_bf16_ref(x_lnd, w_in, b_in, w_out, b_out, num_heads):
    L, N, d = x_lnd.shape
    hd = d // num_heads
    xb = x_lnd.astype(jnp.bfloat16)
    qkv = jnp.einsum("lnd,ed->lne", xb, w_in.astype(jnp.bfloat16),
                     preferred_element_type=jnp.float32) + b_in
    q, k, v = qkv[..., :d], qkv[..., d:2 * d], qkv[..., 2 * d:]

    def split(t):
        return t.reshape(L, N, num_heads, hd).transpose(1, 2, 0, 3)

    qh = (split(q) * (1.0 / math.sqrt(hd))).astype(jnp.bfloat16)
    kh = split(k).astype(jnp.bfloat16)
    vh = split(v).astype(jnp.bfloat16)
    s = jnp.einsum("nhld,nhmd->nhlm", qh, kh,
                   preferred_element_type=jnp.float32)
    s = s - jnp.max(s, axis=-1, keepdims=True)
    pw = jnp.exp(s)
    pw = pw / jnp.sum(pw, axis=-1, keepdims=True)
    o = jnp.einsum("nhlm,nhmd->nhld", pw.astype(jnp.bfloat16), vh,
                   preferred_element_type=jnp.float32)
    o = o.transpose(2, 0, 1, 3).reshape(L, N, d)
    return (jnp.einsum("lnd,ed->lne", o.astype(jnp.bfloat16),
                       w_out.astype(jnp.bfloat16),
                       preferred_element_type=jnp.float32) + b_out)


def factorized_forward_matched_ref(x, p, nhead):
    B, nt, nv, d = x.shape
    shead = thead = nhead // 2
    x_3d = x.reshape(B, nt * nv, d)
    xs = x.reshape(B * nt, nv, d)
    xt = jnp.transpose(x, (0, 2, 1, 3)).reshape(B * nv, nt, d)
    x_s = _mha_bf16_ref(xs, p["s_w_in"], p["s_b_in"], p["s_w_out"],
                        p["s_b_out"], shead).astype(jnp.bfloat16)
    x_s = x_s.reshape(B, nt * nv, d)
    x_t = _mha_bf16_ref(xt, p["t_w_in"], p["t_b_in"], p["t_w_out"],
                        p["t_b_out"], thead).astype(jnp.bfloat16)
    x_t = x_t.reshape(B, nv, nt, d).transpose(0, 2, 1, 3).reshape(B, nt * nv, d)
    ws_s = p["sub_w"][:, :d].astype(jnp.bfloat16)
    ws_t = p["sub_w"][:, d:].astype(jnp.bfloat16)
    x2 = (jnp.einsum("btd,ed->bte", x_s, ws_s,
                     preferred_element_type=jnp.float32)
          + jnp.einsum("btd,ed->bte", x_t, ws_t,
                       preferred_element_type=jnp.float32)
          + p["sub_b"])
    x2 = _layernorm_ref(x2, p["ln1_g"], p["ln1_b"])
    h = jnp.maximum(
        jnp.einsum("btd,fd->btf", x2.astype(jnp.bfloat16),
                   p["w1"].astype(jnp.bfloat16),
                   preferred_element_type=jnp.float32) + p["b1"], 0.0)
    y = (jnp.einsum("btf,ef->bte", h.astype(jnp.bfloat16),
                    p["w2"].astype(jnp.bfloat16),
                    preferred_element_type=jnp.float32) + p["b2"])
    y = x_3d + y
    y = _layernorm_ref(y, p["ln2_g"], p["ln2_b"])
    return y.reshape(B, nt, nv, d)


# ----------------------------------------------------------------------------
# Deterministic synthetic parameters (PyTorch weight layouts).
# ----------------------------------------------------------------------------
def init_params(key, d, dim_ff):
    keys = jax.random.split(key, 18)

    def w(k, shape, scale=0.05):
        return jax.random.normal(k, shape, jnp.float32) * scale

    return {
        "s_w_in": w(keys[0], (3 * d, d)),
        "s_b_in": w(keys[1], (3 * d,)),
        "s_w_out": w(keys[2], (d, d)),
        "s_b_out": w(keys[3], (d,)),
        "t_w_in": w(keys[4], (3 * d, d)),
        "t_b_in": w(keys[5], (3 * d,)),
        "t_w_out": w(keys[6], (d, d)),
        "t_b_out": w(keys[7], (d,)),
        "sub_w": w(keys[8], (d, 2 * d)),
        "sub_b": w(keys[9], (d,)),
        "ln1_g": jnp.ones((d,), jnp.float32) + w(keys[10], (d,), 0.01),
        "ln1_b": w(keys[11], (d,), 0.01),
        "w1": w(keys[12], (dim_ff, d)),
        "b1": w(keys[13], (dim_ff,)),
        "w2": w(keys[14], (d, dim_ff)),
        "b2": w(keys[15], (d,)),
        "ln2_g": jnp.ones((d,), jnp.float32) + w(keys[16], (d,), 0.01),
        "ln2_b": w(keys[17], (d,), 0.01),
    }


if __name__ == "__main__":
    B, nt, nv, d = 2, 4, 4, 32
    nhead = 4
    dim_ff = 64

    key = jax.random.PRNGKey(0)
    kx, kp = jax.random.split(key)
    x = jax.random.normal(kx, (B, nt, nv, d), jnp.float32)
    params = init_params(kp, d, dim_ff)

    fwd = jax.jit(factorized_forward_pallas, static_argnums=(2,))
    out = jax.block_until_ready(fwd(x, params, nhead))
    assert out.shape == (B, nt, nv, d)
    assert bool(jnp.all(jnp.isfinite(out)))

    # Tight check against an XLA reference using the same bf16 matmul casts.
    matched = factorized_forward_matched_ref(x, params, nhead)
    err_m = float(jnp.max(jnp.abs(out - matched)))
    assert bool(jnp.allclose(out, matched, rtol=1e-2, atol=1e-2)), err_m

    # Loose sanity check against the pure-f32 PyTorch-semantics reference
    # (guards against gross errors; slack covers bf16 matmul operands).
    ref32 = factorized_forward_ref(x, params, nhead)
    err_f = float(jnp.max(jnp.abs(out - ref32)))
    assert bool(jnp.allclose(out, ref32, rtol=1e-1, atol=1e-1)), err_f

    print("KERNEL_OK")
</pallas_src>

<mosaic_0001>
module attributes {stable_mosaic.version = 11 : i64} {
  func.func @_mha_block_kernel(%arg0: i32, %arg1: memref<4x8x32xbf16, #tpu.memory_space<vmem>>, %arg2: memref<32x96xbf16, #tpu.memory_space<vmem>>, %arg3: memref<1x96xf32, #tpu.memory_space<vmem>>, %arg4: memref<32x32xbf16, #tpu.memory_space<vmem>>, %arg5: memref<1x32xf32, #tpu.memory_space<vmem>>, %arg6: memref<4x8x32xbf16, #tpu.memory_space<vmem>>) attributes {dimension_semantics = [#tpu.dimension_semantics<parallel>], iteration_bounds = array<i64: 1>, scalar_prefetch = 0 : i64, scratch_operands = 0 : i64, tpu.core_type = #tpu.core_type<tc>, window_params = [{transform_indices = @transform_0, window_bounds = array<i64: 4, 8, 32>}, {pipeline_mode = #tpu.pipeline_mode<synchronous>, transform_indices = @transform_1, window_bounds = array<i64: 32, 96>}, {pipeline_mode = #tpu.pipeline_mode<synchronous>, transform_indices = @transform_2, window_bounds = array<i64: 1, 96>}, {pipeline_mode = #tpu.pipeline_mode<synchronous>, transform_indices = @transform_3, window_bounds = array<i64: 32, 32>}, {pipeline_mode = #tpu.pipeline_mode<synchronous>, transform_indices = @transform_4, window_bounds = array<i64: 1, 32>}, {transform_indices = @transform_5, window_bounds = array<i64: 4, 8, 32>}]} {
    %c0 = arith.constant 0 : index
    %c0_0 = arith.constant 0 : index
    %c0_1 = arith.constant 0 : index
    %0 = vector.load %arg1[%c0, %c0_0, %c0_1] : memref<4x8x32xbf16, #tpu.memory_space<vmem>>, vector<4x8x32xbf16>
    %1 = vector.shape_cast %0 : vector<4x8x32xbf16> to vector<32x32xbf16>
    %c0_2 = arith.constant 0 : index
    %c0_3 = arith.constant 0 : index
    %2 = vector.load %arg2[%c0_2, %c0_3] : memref<32x96xbf16, #tpu.memory_space<vmem>>, vector<32x96xbf16>
    %cst = arith.constant dense<0.000000e+00> : vector<32x96xf32>
    %3 = tpu.matmul %1, %2, %cst {dimension_numbers = #tpu.dot_dimension_numbers<[1], [0], [0], [1], [0, 0, 1, 1], [], []>} : vector<32x32xbf16>, vector<32x96xbf16>, vector<32x96xf32> -> vector<32x96xf32>
    %c0_4 = arith.constant 0 : index
    %c0_5 = arith.constant 0 : index
    %4 = vector.load %arg3[%c0_4, %c0_5] : memref<1x96xf32, #tpu.memory_space<vmem>>, vector<1x96xf32>
    %5 = vector.broadcast %4 : vector<1x96xf32> to vector<32x96xf32>
    %6 = arith.addf %3, %5 : vector<32x96xf32>
    %7 = vector.shape_cast %6 : vector<32x96xf32> to vector<4x8x96xf32>
    %8 = vector.extract_strided_slice %7 {offsets = [0, 0, 0], sizes = [4, 8, 16], strides = [1, 1, 1]} : vector<4x8x96xf32> to vector<4x8x16xf32>
    %cst_6 = arith.constant 2.500000e-01 : f32
    %9 = vector.broadcast %cst_6 : f32 to vector<4x8x16xf32>
    %10 = arith.mulf %8, %9 : vector<4x8x16xf32>
    %11 = arith.truncf %10 : vector<4x8x16xf32> to vector<4x8x16xbf16>
    %12 = vector.extract_strided_slice %7 {offsets = [0, 0, 32], sizes = [4, 8, 16], strides = [1, 1, 1]} : vector<4x8x96xf32> to vector<4x8x16xf32>
    %13 = arith.truncf %12 : vector<4x8x16xf32> to vector<4x8x16xbf16>
    %14 = vector.extract_strided_slice %7 {offsets = [0, 0, 64], sizes = [4, 8, 16], strides = [1, 1, 1]} : vector<4x8x96xf32> to vector<4x8x16xf32>
    %15 = arith.truncf %14 : vector<4x8x16xf32> to vector<4x8x16xbf16>
    %cst_7 = arith.constant dense<0.000000e+00> : vector<4x8x8xf32>
    %16 = tpu.matmul %11, %13, %cst_7 {dimension_numbers = #tpu.dot_dimension_numbers<[2], [2], [1], [1], [0, 0, 0, 1, 1, 1], [0], [0]>} : vector<4x8x16xbf16>, vector<4x8x16xbf16>, vector<4x8x8xf32> -> vector<4x8x8xf32>
    %cst_8 = arith.constant dense<0xFF800000> : vector<4x8xf32>
    %17 = vector.multi_reduction <maximumf>, %16, %cst_8 [2] : vector<4x8x8xf32> to vector<4x8xf32>
    %18 = vector.shape_cast %17 : vector<4x8xf32> to vector<4x8x1xf32>
    %19 = vector.broadcast %18 : vector<4x8x1xf32> to vector<4x8x8xf32>
    %20 = arith.subf %16, %19 : vector<4x8x8xf32>
    %21 = math.exp %20 : vector<4x8x8xf32>
    %cst_9 = arith.constant dense<0.000000e+00> : vector<4x8xf32>
    %22 = vector.multi_reduction <add>, %21, %cst_9 [2] : vector<4x8x8xf32> to vector<4x8xf32>
    %23 = vector.shape_cast %22 : vector<4x8xf32> to vector<4x8x1xf32>
    %24 = tpu.reciprocal %23 {approx = true} : vector<4x8x1xf32> -> vector<4x8x1xf32>
    %25 = vector.broadcast %24 : vector<4x8x1xf32> to vector<4x8x8xf32>
    %26 = arith.mulf %21, %25 : vector<4x8x8xf32>
    %27 = arith.truncf %26 : vector<4x8x8xf32> to vector<4x8x8xbf16>
    %cst_10 = arith.constant dense<0.000000e+00> : vector<4x8x16xf32>
    %28 = tpu.matmul %27, %15, %cst_10 {dimension_numbers = #tpu.dot_dimension_numbers<[2], [1], [1], [2], [0, 0, 0, 1, 1, 2], [0], [0]>} : vector<4x8x8xbf16>, vector<4x8x16xbf16>, vector<4x8x16xf32> -> vector<4x8x16xf32>
    %29 = vector.extract_strided_slice %7 {offsets = [0, 0, 16], sizes = [4, 8, 16], strides = [1, 1, 1]} : vector<4x8x96xf32> to vector<4x8x16xf32>
    %cst_11 = arith.constant 2.500000e-01 : f32
    %30 = vector.broadcast %cst_11 : f32 to vector<4x8x16xf32>
    %31 = arith.mulf %29, %30 : vector<4x8x16xf32>
    %32 = arith.truncf %31 : vector<4x8x16xf32> to vector<4x8x16xbf16>
    %33 = vector.extract_strided_slice %7 {offsets = [0, 0, 48], sizes = [4, 8, 16], strides = [1, 1, 1]} : vector<4x8x96xf32> to vector<4x8x16xf32>
    %34 = arith.truncf %33 : vector<4x8x16xf32> to vector<4x8x16xbf16>
    %35 = vector.extract_strided_slice %7 {offsets = [0, 0, 80], sizes = [4, 8, 16], strides = [1, 1, 1]} : vector<4x8x96xf32> to vector<4x8x16xf32>
    %36 = arith.truncf %35 : vector<4x8x16xf32> to vector<4x8x16xbf16>
    %cst_12 = arith.constant dense<0.000000e+00> : vector<4x8x8xf32>
    %37 = tpu.matmul %32, %34, %cst_12 {dimension_numbers = #tpu.dot_dimension_numbers<[2], [2], [1], [1], [0, 0, 0, 1, 1, 1], [0], [0]>} : vector<4x8x16xbf16>, vector<4x8x16xbf16>, vector<4x8x8xf32> -> vector<4x8x8xf32>
    %cst_13 = arith.constant dense<0xFF800000> : vector<4x8xf32>
    %38 = vector.multi_reduction <maximumf>, %37, %cst_13 [2] : vector<4x8x8xf32> to vector<4x8xf32>
    %39 = vector.shape_cast %38 : vector<4x8xf32> to vector<4x8x1xf32>
    %40 = vector.broadcast %39 : vector<4x8x1xf32> to vector<4x8x8xf32>
    %41 = arith.subf %37, %40 : vector<4x8x8xf32>
    %42 = math.exp %41 : vector<4x8x8xf32>
    %cst_14 = arith.constant dense<0.000000e+00> : vector<4x8xf32>
    %43 = vector.multi_reduction <add>, %42, %cst_14 [2] : vector<4x8x8xf32> to vector<4x8xf32>
    %44 = vector.shape_cast %43 : vector<4x8xf32> to vector<4x8x1xf32>
    %45 = tpu.reciprocal %44 {approx = true} : vector<4x8x1xf32> -> vector<4x8x1xf32>
    %46 = vector.broadcast %45 : vector<4x8x1xf32> to vector<4x8x8xf32>
    %47 = arith.mulf %42, %46 : vector<4x8x8xf32>
    %48 = arith.truncf %47 : vector<4x8x8xf32> to vector<4x8x8xbf16>
    %cst_15 = arith.constant dense<0.000000e+00> : vector<4x8x16xf32>
    %49 = tpu.matmul %48, %36, %cst_15 {dimension_numbers = #tpu.dot_dimension_numbers<[2], [1], [1], [2], [0, 0, 0, 1, 1, 2], [0], [0]>} : vector<4x8x8xbf16>, vector<4x8x16xbf16>, vector<4x8x16xf32> -> vector<4x8x16xf32>
    %50 = tpu.concatenate %28, %49 in 2 : vector<4x8x16xf32>, vector<4x8x16xf32> -> vector<4x8x32xf32>
    %51 = vector.shape_cast %50 : vector<4x8x32xf32> to vector<32x32xf32>
    %52 = arith.truncf %51 : vector<32x32xf32> to vector<32x32xbf16>
    %c0_16 = arith.constant 0 : index
    %c0_17 = arith.constant 0 : index
    %53 = vector.load %arg4[%c0_16, %c0_17] : memref<32x32xbf16, #tpu.memory_space<vmem>>, vector<32x32xbf16>
    %cst_18 = arith.constant dense<0.000000e+00> : vector<32x32xf32>
    %54 = tpu.matmul %52, %53, %cst_18 {dimension_numbers = #tpu.dot_dimension_numbers<[1], [0], [0], [1], [0, 0, 1, 1], [], []>} : vector<32x32xbf16>, vector<32x32xbf16>, vector<32x32xf32> -> vector<32x32xf32>
    %c0_19 = arith.constant 0 : index
    %c0_20 = arith.constant 0 : index
    %55 = vector.load %arg5[%c0_19, %c0_20] : memref<1x32xf32, #tpu.memory_space<vmem>>, vector<1x32xf32>
    %56 = vector.broadcast %55 : vector<1x32xf32> to vector<32x32xf32>
    %57 = arith.addf %54, %56 : vector<32x32xf32>
    %58 = vector.shape_cast %57 : vector<32x32xf32> to vector<4x8x32xf32>
    %59 = arith.truncf %58 : vector<4x8x32xf32> to vector<4x8x32xbf16>
    %c0_21 = arith.constant 0 : index
    %c0_22 = arith.constant 0 : index
    %c0_23 = arith.constant 0 : index
    %60 = vector.load %arg6[%c0_21, %c0_22, %c0_23] : memref<4x8x32xbf16, #tpu.memory_space<vmem>>, vector<4x8x32xbf16>
    tpu.vector_store %arg6[%c0_21, %c0_22, %c0_23], %59 {strides = array<i32>} : memref<4x8x32xbf16, #tpu.memory_space<vmem>>, vector<4x8x32xbf16>,
    return
  }
  func.func @transform_0(%arg0: i32) -> (i32, i32, i32) {
    %c0_i32 = arith.constant 0 : i32
    %c0_i32_0 = arith.constant 0 : i32
    %c0_i32_1 = arith.constant 0 : i32
    return %arg0, %c0_i32, %c0_i32_0 : i32, i32, i32
  }
  func.func @transform_1(%arg0: i32) -> (i32, i32) {
    %c0_i32 = arith.constant 0 : i32
    %c0_i32_0 = arith.constant 0 : i32
    %c0_i32_1 = arith.constant 0 : i32
    return %c0_i32, %c0_i32_0 : i32, i32
  }
  func.func @transform_2(%arg0: i32) -> (i32, i32) {
    %c0_i32 = arith.constant 0 : i32
    %c0_i32_0 = arith.constant 0 : i32
    %c0_i32_1 = arith.constant 0 : i32
    return %c0_i32, %c0_i32_0 : i32, i32
  }
  func.func @transform_3(%arg0: i32) -> (i32, i32) {
    %c0_i32 = arith.constant 0 : i32
    %c0_i32_0 = arith.constant 0 : i32
    %c0_i32_1 = arith.constant 0 : i32
    return %c0_i32, %c0_i32_0 : i32, i32
  }
  func.func @transform_4(%arg0: i32) -> (i32, i32) {
    %c0_i32 = arith.constant 0 : i32
    %c0_i32_0 = arith.constant 0 : i32
    %c0_i32_1 = arith.constant 0 : i32
    return %c0_i32, %c0_i32_0 : i32, i32
  }
  func.func @transform_5(%arg0: i32) -> (i32, i32, i32) {
    %c0_i32 = arith.constant 0 : i32
    %c0_i32_0 = arith.constant 0 : i32
    %c0_i32_1 = arith.constant 0 : i32
    return %arg0, %c0_i32, %c0_i32_0 : i32, i32, i32
  }
}

module attributes {stable_mosaic.version = 11 : i64} {
  func.func @_mha_block_kernel(%arg0: i32, %arg1: memref<2x1x4x32xf32, #tpu.memory_space<vmem>>, %arg2: memref<32x96xbf16, #tpu.memory_space<vmem>>, %arg3: memref<1x96xf32, #tpu.memory_space<vmem>>, %arg4: memref<32x32xbf16, #tpu.memory_space<vmem>>, %arg5: memref<1x32xf32, #tpu.memory_space<vmem>>, %arg6: memref<2x1x4x32xbf16, #tpu.memory_space<vmem>>) attributes {dimension_semantics = [#tpu.dimension_semantics<parallel>], iteration_bounds = array<i64: 4>, scalar_prefetch = 0 : i64, scratch_operands = 0 : i64, tpu.core_type = #tpu.core_type<tc>, window_params = [{transform_indices = @transform_0, window_bounds = array<i64: 2, 1, 4, 32>}, {pipeline_mode = #tpu.pipeline_mode<synchronous>, transform_indices = @transform_1, window_bounds = array<i64: 32, 96>}, {pipeline_mode = #tpu.pipeline_mode<synchronous>, transform_indices = @transform_2, window_bounds = array<i64: 1, 96>}, {pipeline_mode = #tpu.pipeline_mode<synchronous>, transform_indices = @transform_3, window_bounds = array<i64: 32, 32>}, {pipeline_mode = #tpu.pipeline_mode<synchronous>, transform_indices = @transform_4, window_bounds = array<i64: 1, 32>}, {transform_indices = @transform_5, window_bounds = array<i64: 2, 1, 4, 32>}]} {
    %c0 = arith.constant 0 : index
    %c0_0 = arith.constant 0 : index
    %c0_1 = arith.constant 0 : index
    %c0_2 = arith.constant 0 : index
    %0 = vector.load %arg1[%c0, %c0_0, %c0_1, %c0_2] : memref<2x1x4x32xf32, #tpu.memory_space<vmem>>, vector<2x1x4x32xf32>
    %1 = vector.shape_cast %0 : vector<2x1x4x32xf32> to vector<2x4x32xf32>
    %2 = vector.shape_cast %1 : vector<2x4x32xf32> to vector<8x32xf32>
    %3 = arith.truncf %2 : vector<8x32xf32> to vector<8x32xbf16>
    %c0_3 = arith.constant 0 : index
    %c0_4 = arith.constant 0 : index
    %4 = vector.load %arg2[%c0_3, %c0_4] : memref<32x96xbf16, #tpu.memory_space<vmem>>, vector<32x96xbf16>
    %cst = arith.constant dense<0.000000e+00> : vector<8x96xf32>
    %5 = tpu.matmul %3, %4, %cst {dimension_numbers = #tpu.dot_dimension_numbers<[1], [0], [0], [1], [0, 0, 1, 1], [], []>} : vector<8x32xbf16>, vector<32x96xbf16>, vector<8x96xf32> -> vector<8x96xf32>
    %c0_5 = arith.constant 0 : index
    %c0_6 = arith.constant 0 : index
    %6 = vector.load %arg3[%c0_5, %c0_6] : memref<1x96xf32, #tpu.memory_space<vmem>>, vector<1x96xf32>
    %7 = vector.broadcast %6 : vector<1x96xf32> to vector<8x96xf32>
    %8 = arith.addf %5, %7 : vector<8x96xf32>
    %9 = vector.shape_cast %8 : vector<8x96xf32> to vector<1x8x96xf32>
    %10 = vector.extract_strided_slice %9 {offsets = [0, 0, 0], sizes = [1, 8, 16], strides = [1, 1, 1]} : vector<1x8x96xf32> to vector<1x8x16xf32>
    %cst_7 = arith.constant 2.500000e-01 : f32
    %11 = vector.broadcast %cst_7 : f32 to vector<1x8x16xf32>
    %12 = arith.mulf %10, %11 : vector<1x8x16xf32>
    %13 = arith.truncf %12 : vector<1x8x16xf32> to vector<1x8x16xbf16>
    %14 = vector.extract_strided_slice %9 {offsets = [0, 0, 32], sizes = [1, 8, 16], strides = [1, 1, 1]} : vector<1x8x96xf32> to vector<1x8x16xf32>
    %15 = arith.truncf %14 : vector<1x8x16xf32> to vector<1x8x16xbf16>
    %16 = vector.extract_strided_slice %9 {offsets = [0, 0, 64], sizes = [1, 8, 16], strides = [1, 1, 1]} : vector<1x8x96xf32> to vector<1x8x16xf32>
    %17 = arith.truncf %16 : vector<1x8x16xf32> to vector<1x8x16xbf16>
    %cst_8 = arith.constant dense<0.000000e+00> : vector<1x8x8xf32>
    %18 = tpu.matmul %13, %15, %cst_8 {dimension_numbers = #tpu.dot_dimension_numbers<[2], [2], [1], [1], [0, 0, 0, 1, 1, 1], [0], [0]>} : vector<1x8x16xbf16>, vector<1x8x16xbf16>, vector<1x8x8xf32> -> vector<1x8x8xf32>
    %cst_9 = arith.constant dense<0xFF800000> : vector<1x8xf32>
    %19 = vector.multi_reduction <maximumf>, %18, %cst_9 [2] : vector<1x8x8xf32> to vector<1x8xf32>
    %20 = vector.shape_cast %19 : vector<1x8xf32> to vector<1x8x1xf32>
    %21 = vector.broadcast %20 : vector<1x8x1xf32> to vector<1x8x8xf32>
    %22 = arith.subf %18, %21 : vector<1x8x8xf32>
    %23 = math.exp %22 : vector<1x8x8xf32>
    %cst_10 = arith.constant dense<0.000000e+00> : vector<1x8xf32>
    %24 = vector.multi_reduction <add>, %23, %cst_10 [2] : vector<1x8x8xf32> to vector<1x8xf32>
    %25 = vector.shape_cast %24 : vector<1x8xf32> to vector<1x8x1xf32>
    %26 = tpu.reciprocal %25 {approx = true} : vector<1x8x1xf32> -> vector<1x8x1xf32>
    %27 = vector.broadcast %26 : vector<1x8x1xf32> to vector<1x8x8xf32>
    %28 = arith.mulf %23, %27 : vector<1x8x8xf32>
    %29 = arith.truncf %28 : vector<1x8x8xf32> to vector<1x8x8xbf16>
    %cst_11 = arith.constant dense<0.000000e+00> : vector<1x8x16xf32>
    %30 = tpu.matmul %29, %17, %cst_11 {dimension_numbers = #tpu.dot_dimension_numbers<[2], [1], [1], [2], [0, 0, 0, 1, 1, 2], [0], [0]>} : vector<1x8x8xbf16>, vector<1x8x16xbf16>, vector<1x8x16xf32> -> vector<1x8x16xf32>
    %31 = vector.extract_strided_slice %9 {offsets = [0, 0, 16], sizes = [1, 8, 16], strides = [1, 1, 1]} : vector<1x8x96xf32> to vector<1x8x16xf32>
    %cst_12 = arith.constant 2.500000e-01 : f32
    %32 = vector.broadcast %cst_12 : f32 to vector<1x8x16xf32>
    %33 = arith.mulf %31, %32 : vector<1x8x16xf32>
    %34 = arith.truncf %33 : vector<1x8x16xf32> to vector<1x8x16xbf16>
    %35 = vector.extract_strided_slice %9 {offsets = [0, 0, 48], sizes = [1, 8, 16], strides = [1, 1, 1]} : vector<1x8x96xf32> to vector<1x8x16xf32>
    %36 = arith.truncf %35 : vector<1x8x16xf32> to vector<1x8x16xbf16>
    %37 = vector.extract_strided_slice %9 {offsets = [0, 0, 80], sizes = [1, 8, 16], strides = [1, 1, 1]} : vector<1x8x96xf32> to vector<1x8x16xf32>
    %38 = arith.truncf %37 : vector<1x8x16xf32> to vector<1x8x16xbf16>
    %cst_13 = arith.constant dense<0.000000e+00> : vector<1x8x8xf32>
    %39 = tpu.matmul %34, %36, %cst_13 {dimension_numbers = #tpu.dot_dimension_numbers<[2], [2], [1], [1], [0, 0, 0, 1, 1, 1], [0], [0]>} : vector<1x8x16xbf16>, vector<1x8x16xbf16>, vector<1x8x8xf32> -> vector<1x8x8xf32>
    %cst_14 = arith.constant dense<0xFF800000> : vector<1x8xf32>
    %40 = vector.multi_reduction <maximumf>, %39, %cst_14 [2] : vector<1x8x8xf32> to vector<1x8xf32>
    %41 = vector.shape_cast %40 : vector<1x8xf32> to vector<1x8x1xf32>
    %42 = vector.broadcast %41 : vector<1x8x1xf32> to vector<1x8x8xf32>
    %43 = arith.subf %39, %42 : vector<1x8x8xf32>
    %44 = math.exp %43 : vector<1x8x8xf32>
    %cst_15 = arith.constant dense<0.000000e+00> : vector<1x8xf32>
    %45 = vector.multi_reduction <add>, %44, %cst_15 [2] : vector<1x8x8xf32> to vector<1x8xf32>
    %46 = vector.shape_cast %45 : vector<1x8xf32> to vector<1x8x1xf32>
    %47 = tpu.reciprocal %46 {approx = true} : vector<1x8x1xf32> -> vector<1x8x1xf32>
    %48 = vector.broadcast %47 : vector<1x8x1xf32> to vector<1x8x8xf32>
    %49 = arith.mulf %44, %48 : vector<1x8x8xf32>
    %50 = arith.truncf %49 : vector<1x8x8xf32> to vector<1x8x8xbf16>
    %cst_16 = arith.constant dense<0.000000e+00> : vector<1x8x16xf32>
    %51 = tpu.matmul %50, %38, %cst_16 {dimension_numbers = #tpu.dot_dimension_numbers<[2], [1], [1], [2], [0, 0, 0, 1, 1, 2], [0], [0]>} : vector<1x8x8xbf16>, vector<1x8x16xbf16>, vector<1x8x16xf32> -> vector<1x8x16xf32>
    %52 = tpu.concatenate %30, %51 in 2 : vector<1x8x16xf32>, vector<1x8x16xf32> -> vector<1x8x32xf32>
    %53 = vector.shape_cast %52 : vector<1x8x32xf32> to vector<8x32xf32>
    %54 = arith.truncf %53 : vector<8x32xf32> to vector<8x32xbf16>
    %c0_17 = arith.constant 0 : index
    %c0_18 = arith.constant 0 : index
    %55 = vector.load %arg4[%c0_17, %c0_18] : memref<32x32xbf16, #tpu.memory_space<vmem>>, vector<32x32xbf16>
    %cst_19 = arith.constant dense<0.000000e+00> : vector<8x32xf32>
    %56 = tpu.matmul %54, %55, %cst_19 {dimension_numbers = #tpu.dot_dimension_numbers<[1], [0], [0], [1], [0, 0, 1, 1], [], []>} : vector<8x32xbf16>, vector<32x32xbf16>, vector<8x32xf32> -> vector<8x32xf32>
    %c0_20 = arith.constant 0 : index
    %c0_21 = arith.constant 0 : index
    %57 = vector.load %arg5[%c0_20, %c0_21] : memref<1x32xf32, #tpu.memory_space<vmem>>, vector<1x32xf32>
    %58 = vector.broadcast %57 : vector<1x32xf32> to vector<8x32xf32>
    %59 = arith.addf %56, %58 : vector<8x32xf32>
    %60 = vector.shape_cast %59 : vector<8x32xf32> to vector<2x4x32xf32>
    %61 = arith.truncf %60 : vector<2x4x32xf32> to vector<2x4x32xbf16>
    %c0_22 = arith.constant 0 : index
    %c0_23 = arith.constant 0 : index
    %c0_24 = arith.constant 0 : index
    %c0_25 = arith.constant 0 : index
    %62 = vector.load %arg6[%c0_22, %c0_23, %c0_24, %c0_25] : memref<2x1x4x32xbf16, #tpu.memory_space<vmem>>, vector<2x1x4x32xbf16>
    %63 = vector.shape_cast %62 : vector<2x1x4x32xbf16> to vector<2x4x32xbf16>
    %64 = vector.shape_cast %61 : vector<2x4x32xbf16> to vector<2x1x4x32xbf16>
    tpu.vector_store %arg6[%c0_22, %c0_23, %c0_24, %c0_25], %64 {strides = array<i32>} : memref<2x1x4x32xbf16, #tpu.memory_space<vmem>>, vector<2x1x4x32xbf16>,
    return
  }
  func.func @transform_0(%arg0: i32) -> (i32, i32, i32, i32) {
    %c0_i32 = arith.constant 0 : i32
    %c0_i32_0 = arith.constant 0 : i32
    %c0_i32_1 = arith.constant 0 : i32
    %c0_i32_2 = arith.constant 0 : i32
    return %c0_i32, %arg0, %c0_i32_0, %c0_i32_1 : i32, i32, i32, i32
  }
  func.func @transform_1(%arg0: i32) -> (i32, i32) {
    %c0_i32 = arith.constant 0 : i32
    %c0_i32_0 = arith.constant 0 : i32
    %c0_i32_1 = arith.constant 0 : i32
    return %c0_i32, %c0_i32_0 : i32, i32
  }
  func.func @transform_2(%arg0: i32) -> (i32, i32) {
    %c0_i32 = arith.constant 0 : i32
    %c0_i32_0 = arith.constant 0 : i32
    %c0_i32_1 = arith.constant 0 : i32
    return %c0_i32, %c0_i32_0 : i32, i32
  }
  func.func @transform_3(%arg0: i32) -> (i32, i32) {
    %c0_i32 = arith.constant 0 : i32
    %c0_i32_0 = arith.constant 0 : i32
    %c0_i32_1 = arith.constant 0 : i32
    return %c0_i32, %c0_i32_0 : i32, i32
  }
  func.func @transform_4(%arg0: i32) -> (i32, i32) {
    %c0_i32 = arith.constant 0 : i32
    %c0_i32_0 = arith.constant 0 : i32
    %c0_i32_1 = arith.constant 0 : i32
    return %c0_i32, %c0_i32_0 : i32, i32
  }
  func.func @transform_5(%arg0: i32) -> (i32, i32, i32, i32) {
    %c0_i32 = arith.constant 0 : i32
    %c0_i32_0 = arith.constant 0 : i32
    %c0_i32_1 = arith.constant 0 : i32
    %c0_i32_2 = arith.constant 0 : i32
    return %c0_i32, %arg0, %c0_i32_0, %c0_i32_1 : i32, i32, i32, i32
  }
}

module attributes {stable_mosaic.version = 11 : i64} {
  func.func @_encoder_tail_kernel(%arg0: i32, %arg1: memref<32x32xbf16, #tpu.memory_space<vmem>>, %arg2: memref<32x32xbf16, #tpu.memory_space<vmem>>, %arg3: memref<32x32xf32, #tpu.memory_space<vmem>>, %arg4: memref<32x32xbf16, #tpu.memory_space<vmem>>, %arg5: memref<32x32xbf16, #tpu.memory_space<vmem>>, %arg6: memref<1x32xf32, #tpu.memory_space<vmem>>, %arg7: memref<1x32xf32, #tpu.memory_space<vmem>>, %arg8: memref<1x32xf32, #tpu.memory_space<vmem>>, %arg9: memref<32x64xbf16, #tpu.memory_space<vmem>>, %arg10: memref<1x64xf32, #tpu.memory_space<vmem>>, %arg11: memref<64x32xbf16, #tpu.memory_space<vmem>>, %arg12: memref<1x32xf32, #tpu.memory_space<vmem>>, %arg13: memref<1x32xf32, #tpu.memory_space<vmem>>, %arg14: memref<1x32xf32, #tpu.memory_space<vmem>>, %arg15: memref<32x32xf32, #tpu.memory_space<vmem>>) attributes {dimension_semantics = [#tpu.dimension_semantics<parallel>], iteration_bounds = array<i64: 1>, scalar_prefetch = 0 : i64, scratch_operands = 0 : i64, tpu.core_type = #tpu.core_type<tc>, window_params = [{transform_indices = @transform_0, window_bounds = array<i64: 32, 32>}, {transform_indices = @transform_1, window_bounds = array<i64: 32, 32>}, {transform_indices = @transform_2, window_bounds = array<i64: 32, 32>}, {pipeline_mode = #tpu.pipeline_mode<synchronous>, transform_indices = @transform_3, window_bounds = array<i64: 32, 32>}, {pipeline_mode = #tpu.pipeline_mode<synchronous>, transform_indices = @transform_4, window_bounds = array<i64: 32, 32>}, {pipeline_mode = #tpu.pipeline_mode<synchronous>, transform_indices = @transform_5, window_bounds = array<i64: 1, 32>}, {pipeline_mode = #tpu.pipeline_mode<synchronous>, transform_indices = @transform_6, window_bounds = array<i64: 1, 32>}, {pipeline_mode = #tpu.pipeline_mode<synchronous>, transform_indices = @transform_7, window_bounds = array<i64: 1, 32>}, {pipeline_mode = #tpu.pipeline_mode<synchronous>, transform_indices = @transform_8, window_bounds = array<i64: 32, 64>}, {pipeline_mode = #tpu.pipeline_mode<synchronous>, transform_indices = @transform_9, window_bounds = array<i64: 1, 64>}, {pipeline_mode = #tpu.pipeline_mode<synchronous>, transform_indices = @transform_10, window_bounds = array<i64: 64, 32>}, {pipeline_mode = #tpu.pipeline_mode<synchronous>, transform_indices = @transform_11, window_bounds = array<i64: 1, 32>}, {pipeline_mode = #tpu.pipeline_mode<synchronous>, transform_indices = @transform_12, window_bounds = array<i64: 1, 32>}, {pipeline_mode = #tpu.pipeline_mode<synchronous>, transform_indices = @transform_13, window_bounds = array<i64: 1, 32>}, {transform_indices = @transform_14, window_bounds = array<i64: 32, 32>}]} {
    %c0 = arith.constant 0 : index
    %c0_0 = arith.constant 0 : index
    %0 = vector.load %arg1[%c0, %c0_0] : memref<32x32xbf16, #tpu.memory_space<vmem>>, vector<32x32xbf16>
    %c0_1 = arith.constant 0 : index
    %c0_2 = arith.constant 0 : index
    %1 = vector.load %arg2[%c0_1, %c0_2] : memref<32x32xbf16, #tpu.memory_space<vmem>>, vector<32x32xbf16>
    %c0_3 = arith.constant 0 : index
    %c0_4 = arith.constant 0 : index
    %2 = vector.load %arg3[%c0_3, %c0_4] : memref<32x32xf32, #tpu.memory_space<vmem>>, vector<32x32xf32>
    %c0_5 = arith.constant 0 : index
    %c0_6 = arith.constant 0 : index
    %3 = vector.load %arg4[%c0_5, %c0_6] : memref<32x32xbf16, #tpu.memory_space<vmem>>, vector<32x32xbf16>
    %cst = arith.constant dense<0.000000e+00> : vector<32x32xf32>
    %4 = tpu.matmul %0, %3, %cst {dimension_numbers = #tpu.dot_dimension_numbers<[1], [0], [0], [1], [0, 0, 1, 1], [], []>} : vector<32x32xbf16>, vector<32x32xbf16>, vector<32x32xf32> -> vector<32x32xf32>
    %c0_7 = arith.constant 0 : index
    %c0_8 = arith.constant 0 : index
    %5 = vector.load %arg5[%c0_7, %c0_8] : memref<32x32xbf16, #tpu.memory_space<vmem>>, vector<32x32xbf16>
    %cst_9 = arith.constant dense<0.000000e+00> : vector<32x32xf32>
    %6 = tpu.matmul %1, %5, %cst_9 {dimension_numbers = #tpu.dot_dimension_numbers<[1], [0], [0], [1], [0, 0, 1, 1], [], []>} : vector<32x32xbf16>, vector<32x32xbf16>, vector<32x32xf32> -> vector<32x32xf32>
    %7 = arith.addf %4, %6 : vector<32x32xf32>
    %c0_10 = arith.constant 0 : index
    %c0_11 = arith.constant 0 : index
    %8 = vector.load %arg6[%c0_10, %c0_11] : memref<1x32xf32, #tpu.memory_space<vmem>>, vector<1x32xf32>
    %9 = vector.broadcast %8 : vector<1x32xf32> to vector<32x32xf32>
    %10 = arith.addf %7, %9 : vector<32x32xf32>
    %cst_12 = arith.constant dense<0.000000e+00> : vector<32xf32>
    %11 = vector.multi_reduction <add>, %10, %cst_12 [1] : vector<32x32xf32> to vector<32xf32>
    %12 = vector.shape_cast %11 : vector<32xf32> to vector<32x1xf32>
    %cst_13 = arith.constant 3.200000e+01 : f32
    %13 = vector.broadcast %cst_13 : f32 to vector<32x1xf32>
    %14 = arith.divf %12, %13 : vector<32x1xf32>
    %15 = vector.broadcast %14 : vector<32x1xf32> to vector<32x32xf32>
    %16 = arith.subf %10, %15 : vector<32x32xf32>
    %17 = arith.mulf %16, %16 : vector<32x32xf32>
    %cst_14 = arith.constant dense<0.000000e+00> : vector<32xf32>
    %18 = vector.multi_reduction <add>, %17, %cst_14 [1] : vector<32x32xf32> to vector<32xf32>
    %19 = vector.shape_cast %18 : vector<32xf32> to vector<32x1xf32>
    %cst_15 = arith.constant 3.200000e+01 : f32
    %20 = vector.broadcast %cst_15 : f32 to vector<32x1xf32>
    %21 = arith.divf %19, %20 : vector<32x1xf32>
    %22 = vector.broadcast %14 : vector<32x1xf32> to vector<32x32xf32>
    %23 = arith.subf %10, %22 : vector<32x32xf32>
    %cst_16 = arith.constant 9.99999974E-6 : f32
    %24 = vector.broadcast %cst_16 : f32 to vector<32x1xf32>
    %25 = arith.addf %21, %24 : vector<32x1xf32>
    %26 = math.rsqrt %25 : vector<32x1xf32>
    %27 = vector.broadcast %26 : vector<32x1xf32> to vector<32x32xf32>
    %28 = arith.mulf %23, %27 : vector<32x32xf32>
    %c0_17 = arith.constant 0 : index
    %c0_18 = arith.constant 0 : index
    %29 = vector.load %arg7[%c0_17, %c0_18] : memref<1x32xf32, #tpu.memory_space<vmem>>, vector<1x32xf32>
    %30 = vector.broadcast %29 : vector<1x32xf32> to vector<32x32xf32>
    %31 = arith.mulf %28, %30 : vector<32x32xf32>
    %c0_19 = arith.constant 0 : index
    %c0_20 = arith.constant 0 : index
    %32 = vector.load %arg8[%c0_19, %c0_20] : memref<1x32xf32, #tpu.memory_space<vmem>>, vector<1x32xf32>
    %33 = vector.broadcast %32 : vector<1x32xf32> to vector<32x32xf32>
    %34 = arith.addf %31, %33 : vector<32x32xf32>
    %35 = arith.truncf %34 : vector<32x32xf32> to vector<32x32xbf16>
    %c0_21 = arith.constant 0 : index
    %c0_22 = arith.constant 0 : index
    %36 = vector.load %arg9[%c0_21, %c0_22] : memref<32x64xbf16, #tpu.memory_space<vmem>>, vector<32x64xbf16>
    %cst_23 = arith.constant dense<0.000000e+00> : vector<32x64xf32>
    %37 = tpu.matmul %35, %36, %cst_23 {dimension_numbers = #tpu.dot_dimension_numbers<[1], [0], [0], [1], [0, 0, 1, 1], [], []>} : vector<32x32xbf16>, vector<32x64xbf16>, vector<32x64xf32> -> vector<32x64xf32>
    %c0_24 = arith.constant 0 : index
    %c0_25 = arith.constant 0 : index
    %38 = vector.load %arg10[%c0_24, %c0_25] : memref<1x64xf32, #tpu.memory_space<vmem>>, vector<1x64xf32>
    %39 = vector.broadcast %38 : vector<1x64xf32> to vector<32x64xf32>
    %40 = arith.addf %37, %39 : vector<32x64xf32>
    %cst_26 = arith.constant 0.000000e+00 : f32
    %41 = vector.broadcast %cst_26 : f32 to vector<32x64xf32>
    %42 = arith.maximumf %40, %41 : vector<32x64xf32>
    %43 = arith.truncf %42 : vector<32x64xf32> to vector<32x64xbf16>
    %c0_27 = arith.constant 0 : index
    %c0_28 = arith.constant 0 : index
    %44 = vector.load %arg11[%c0_27, %c0_28] : memref<64x32xbf16, #tpu.memory_space<vmem>>, vector<64x32xbf16>
    %cst_29 = arith.constant dense<0.000000e+00> : vector<32x32xf32>
    %45 = tpu.matmul %43, %44, %cst_29 {dimension_numbers = #tpu.dot_dimension_numbers<[1], [0], [0], [1], [0, 0, 1, 1], [], []>} : vector<32x64xbf16>, vector<64x32xbf16>, vector<32x32xf32> -> vector<32x32xf32>
    %c0_30 = arith.constant 0 : index
    %c0_31 = arith.constant 0 : index
    %46 = vector.load %arg12[%c0_30, %c0_31] : memref<1x32xf32, #tpu.memory_space<vmem>>, vector<1x32xf32>
    %47 = vector.broadcast %46 : vector<1x32xf32> to vector<32x32xf32>
    %48 = arith.addf %45, %47 : vector<32x32xf32>
    %49 = arith.addf %2, %48 : vector<32x32xf32>
    %cst_32 = arith.constant dense<0.000000e+00> : vector<32xf32>
    %50 = vector.multi_reduction <add>, %49, %cst_32 [1] : vector<32x32xf32> to vector<32xf32>
    %51 = vector.shape_cast %50 : vector<32xf32> to vector<32x1xf32>
    %cst_33 = arith.constant 3.200000e+01 : f32
    %52 = vector.broadcast %cst_33 : f32 to vector<32x1xf32>
    %53 = arith.divf %51, %52 : vector<32x1xf32>
    %54 = vector.broadcast %53 : vector<32x1xf32> to vector<32x32xf32>
    %55 = arith.subf %49, %54 : vector<32x32xf32>
    %56 = arith.mulf %55, %55 : vector<32x32xf32>
    %cst_34 = arith.constant dense<0.000000e+00> : vector<32xf32>
    %57 = vector.multi_reduction <add>, %56, %cst_34 [1] : vector<32x32xf32> to vector<32xf32>
    %58 = vector.shape_cast %57 : vector<32xf32> to vector<32x1xf32>
    %cst_35 = arith.constant 3.200000e+01 : f32
    %59 = vector.broadcast %cst_35 : f32 to vector<32x1xf32>
    %60 = arith.divf %58, %59 : vector<32x1xf32>
    %61 = vector.broadcast %53 : vector<32x1xf32> to vector<32x32xf32>
    %62 = arith.subf %49, %61 : vector<32x32xf32>
    %cst_36 = arith.constant 9.99999974E-6 : f32
    %63 = vector.broadcast %cst_36 : f32 to vector<32x1xf32>
    %64 = arith.addf %60, %63 : vector<32x1xf32>
    %65 = math.rsqrt %64 : vector<32x1xf32>
    %66 = vector.broadcast %65 : vector<32x1xf32> to vector<32x32xf32>
    %67 = arith.mulf %62, %66 : vector<32x32xf32>
    %c0_37 = arith.constant 0 : index
    %c0_38 = arith.constant 0 : index
    %68 = vector.load %arg13[%c0_37, %c0_38] : memref<1x32xf32, #tpu.memory_space<vmem>>, vector<1x32xf32>
    %69 = vector.broadcast %68 : vector<1x32xf32> to vector<32x32xf32>
    %70 = arith.mulf %67, %69 : vector<32x32xf32>
    %c0_39 = arith.constant 0 : index
    %c0_40 = arith.constant 0 : index
    %71 = vector.load %arg14[%c0_39, %c0_40] : memref<1x32xf32, #tpu.memory_space<vmem>>, vector<1x32xf32>
    %72 = vector.broadcast %71 : vector<1x32xf32> to vector<32x32xf32>
    %73 = arith.addf %70, %72 : vector<32x32xf32>
    %c0_41 = arith.constant 0 : index
    %c0_42 = arith.constant 0 : index
    %74 = vector.load %arg15[%c0_41, %c0_42] : memref<32x32xf32, #tpu.memory_space<vmem>>, vector<32x32xf32>
    tpu.vector_store %arg15[%c0_41, %c0_42], %73 {strides = array<i32>} : memref<32x32xf32, #tpu.memory_space<vmem>>, vector<32x32xf32>,
    return
  }
  func.func @transform_0(%arg0: i32) -> (i32, i32) {
    %c0_i32 = arith.constant 0 : i32
    %c0_i32_0 = arith.constant 0 : i32
    return %arg0, %c0_i32 : i32, i32
  }
  func.func @transform_1(%arg0: i32) -> (i32, i32) {
    %c0_i32 = arith.constant 0 : i32
    %c0_i32_0 = arith.constant 0 : i32
    return %arg0, %c0_i32 : i32, i32
  }
  func.func @transform_2(%arg0: i32) -> (i32, i32) {
    %c0_i32 = arith.constant 0 : i32
    %c0_i32_0 = arith.constant 0 : i32
    return %arg0, %c0_i32 : i32, i32
  }
  func.func @transform_3(%arg0: i32) -> (i32, i32) {
    %c0_i32 = arith.constant 0 : i32
    %c0_i32_0 = arith.constant 0 : i32
    %c0_i32_1 = arith.constant 0 : i32
    return %c0_i32, %c0_i32_0 : i32, i32
  }
  func.func @transform_4(%arg0: i32) -> (i32, i32) {
    %c0_i32 = arith.constant 0 : i32
    %c0_i32_0 = arith.constant 0 : i32
    %c0_i32_1 = arith.constant 0 : i32
    return %c0_i32, %c0_i32_0 : i32, i32
  }
  func.func @transform_5(%arg0: i32) -> (i32, i32) {
    %c0_i32 = arith.constant 0 : i32
    %c0_i32_0 = arith.constant 0 : i32
    %c0_i32_1 = arith.constant 0 : i32
    return %c0_i32, %c0_i32_0 : i32, i32
  }
  func.func @transform_6(%arg0: i32) -> (i32, i32) {
    %c0_i32 = arith.constant 0 : i32
    %c0_i32_0 = arith.constant 0 : i32
    %c0_i32_1 = arith.constant 0 : i32
    return %c0_i32, %c0_i32_0 : i32, i32
  }
  func.func @transform_7(%arg0: i32) -> (i32, i32) {
    %c0_i32 = arith.constant 0 : i32
    %c0_i32_0 = arith.constant 0 : i32
    %c0_i32_1 = arith.constant 0 : i32
    return %c0_i32, %c0_i32_0 : i32, i32
  }
  func.func @transform_8(%arg0: i32) -> (i32, i32) {
    %c0_i32 = arith.constant 0 : i32
    %c0_i32_0 = arith.constant 0 : i32
    %c0_i32_1 = arith.constant 0 : i32
    return %c0_i32, %c0_i32_0 : i32, i32
  }
  func.func @transform_9(%arg0: i32) -> (i32, i32) {
    %c0_i32 = arith.constant 0 : i32
    %c0_i32_0 = arith.constant 0 : i32
    %c0_i32_1 = arith.constant 0 : i32
    return %c0_i32, %c0_i32_0 : i32, i32
  }
  func.func @transform_10(%arg0: i32) -> (i32, i32) {
    %c0_i32 = arith.constant 0 : i32
    %c0_i32_0 = arith.constant 0 : i32
    %c0_i32_1 = arith.constant 0 : i32
    return %c0_i32, %c0_i32_0 : i32, i32
  }
  func.func @transform_11(%arg0: i32) -> (i32, i32) {
    %c0_i32 = arith.constant 0 : i32
    %c0_i32_0 = arith.constant 0 : i32
    %c0_i32_1 = arith.constant 0 : i32
    return %c0_i32, %c0_i32_0 : i32, i32
  }
  func.func @transform_12(%arg0: i32) -> (i32, i32) {
    %c0_i32 = arith.constant 0 : i32
    %c0_i32_0 = arith.constant 0 : i32
    %c0_i32_1 = arith.constant 0 : i32
    return %c0_i32, %c0_i32_0 : i32, i32
  }
  func.func @transform_13(%arg0: i32) -> (i32, i32) {
    %c0_i32 = arith.constant 0 : i32
    %c0_i32_0 = arith.constant 0 : i32
    %c0_i32_1 = arith.constant 0 : i32
    return %c0_i32, %c0_i32_0 : i32, i32
  }
  func.func @transform_14(%arg0: i32) -> (i32, i32) {
    %c0_i32 = arith.constant 0 : i32
    %c0_i32_0 = arith.constant 0 : i32
    return %arg0, %c0_i32 : i32, i32
  }
}

</mosaic_0001>

<bundles_post_ra>
// kernel: factorized_forward_pallas.4
= control target key start
LH: loop header
LB: loop body
LE: loop exit
PB: predicated region body
PF: predicated region fallthrough
CT: control target
= control target key end

     0   :  { %s727_s18 = smov 0   ;;  %s729_s19 = smov 0   ;;  %s822_s0 = inlined_call_operand.vmem [shape: f32[2,4,4,32], index: 0, kind: input, shape index: {}]   ;;  %s823_s1 = inlined_call_operand.vmem [shape: bf16[32,96], index: 1, kind: input, shape index: {}]   ;;  %s824_s2 = inlined_call_operand.vmem [shape: f32[1,96], index: 2, kind: input, shape index: {}]   ;;  %s825_s3 = inlined_call_operand.vmem [shape: bf16[32,32], index: 3, kind: input, shape index: {}]   ;;  %s826_s4 = inlined_call_operand.vmem [shape: f32[1,32], index: 4, kind: input, shape index: {}]   ;;  %s827_s5 = inlined_call_operand.vmem [shape: bf16[2,4,4,32], index: 5, kind: output, shape index: {}]  }
   0x1   :  { %s731_s20 = smov 0  }
   0x2 LB: > { %s588_s21 = sadd.s32 4294967295, %s689_s20   ;;  %s744_s22 = sadd.s32 1, %s689_s20   ;;  %s689_s20 = sphi %s731_s20, %s831_s20   ;;  %s685_s19 = sphi %s729_s19, %s830_s19   ;;  %s681_s18 = sphi %s727_s18, %s829_s18  }
   0x3   : > { %s19_s23 = ssub.s32 %s689_s20, %s744_s22  ;;  %s22_s24 = sadd.s32 1, %s685_s19 }
   0x4   : > { %p20_p0 = scmp.eq.s32.totalorder %s19_s23, 0  ;;  %p29_p1 = scmp.ne.s32.totalorder %s685_s19, %s681_s18 }
   0x5   : > { %p30_p2 = scmp.eq.s32.totalorder %s689_s20, 0  ;;  %p143_p3 = scmp.eq.s32.totalorder %s588_s21, 3 }
   0x6   : > { %s755_s25 = scalar_select %p20_p0, %s685_s19, %s22_s24  }
   0x7   : > { %p31_p4 = por %p30_p2, %p29_p1  ;;  %p757_p5 = por %p143_p3, %p29_p1 }
   0x8   : > { %p591_p6 = scmp.ge.s32.totalorder %s689_s20, 4 }
   0xa   : > { %177 = sbr.rel (%p591_p6) target bundleno = 21 (0x15), region = 32 }
   0xf   : > { %180 = sbr.rel (!%p31_p4) target bundleno = 21 (0x15), region = 36  ;;  %s182_s27 = sand.u32 (%p31_p4), 1, %s685_s19  }
  0x10   : > { %s593_s28 = sshll.u32 (%p31_p4), %s689_s20, 2  ;;  %s592_s29 = sshll.u32 (%p31_p4), %s182_s27, 3 }
  0x11   : > { %s186_s7 = scalar_lea.vmem (%p31_p4), %s822_s0, %s593_s28  ;;  %s184_s8 = scalar_lea.vmem (%p31_p4), [#allocation2], %s592_s29 }
  0x12   : > { %v203_v0 = vld [vmem:[%s186_s7] sm:$0xf] (%p31_p4)  ;;  %v205_v1 = vld [vmem:[%s186_s7 + $0x10] sm:$0xf] (%p31_p4) }
  0x13   : > { %204 = vst [vmem:[%s184_s8] sm:$0xf] (%p31_p4), %v203_v0 }
  0x14   : > { %206 = vst [vmem:[%s184_s8 + $0x4] sm:$0xf] %v205_v1 }
  0x15 PF: > { %p594_p7 = scmp.ge.s32.totalorder %s689_s20, 1  ;;  %p233_p8 = scmp.lt.s32.totalorder %s689_s20, 5 }
  0x17   : > { %p234_p9 = pnand %p594_p7, %p233_p8 }
  0x18   : > { %s240_s11 = sand.u32 (!%p234_p9), 1, %s681_s18   ;;  %s691_s23 = smov (!%p234_p9), 96  }
  0x19   : > { %237 = sbr.rel (%p234_p9) target bundleno = 1065 (0x429), region = 77  ;;  %s595_s12 = sshll.u32 (!%p234_p9), %s240_s11, 3 }
  0x1a   : > { %s242_s15 = scalar_lea.vmem (!%p234_p9), [#allocation2], %s595_s12  ;;  %s692_s24 = smov (!%p234_p9), 112  }
  0x1b   : > { %s693_s27 = smov (!%p234_p9), 80   ;;  %s694_s28 = smov (!%p234_p9), 64  }
  0x1c   : > { %s695_s29 = smov (!%p234_p9), 48   ;;  %s696_s9 = smov (!%p234_p9), 16  }
  0x1d   : > { %s596_s13 = sshll.u32 (!%p234_p9), %s240_s11, 2 }
  0x1e   : > { %v624_v2 = vld [vmem:[%s823_s1 + $0x8] sm:$0xff]  ;;  %v623_v3 = vld [vmem:[%s823_s1] sm:$0xff]  ;;  %vm297_vm0 = vcmask 261120   ;;  %vm322_vm1 = vcmask 130048   ;;  %vm360_vm2 = vcmask 1043456   ;;  %vm342_vm3 = vcmask 64512  }
  0x1f   : > { %307 = vmatpush.bf16.msra.mxu0 %v624_v2  ;;  %v267_v4 = vld [vmem:[%s242_s15] sm:$0xf]  ;;  %v268_v5 = vld [vmem:[%s242_s15 + $0x4] sm:$0xf]  ;;  %v657_v8 = vld [vmem:[%s824_s2] ss:$0 sm:$0xff] }
  0x20   : > { %271 = vst [vmem:[#allocation1] ss:$2 sm:$0xff] %v267_v4  ;;  %v626_v52 = vld [vmem:[%s825_s3 + $0x8] sm:$0xff]  ;;  %v625_v53 = vld [vmem:[%s825_s3] sm:$0xff]  ;;  %vm483_vm4 = vcmask 254976   ;;  %s265_s14 = scalar_lea.vmem [#allocation3], %s596_s13 }
  0x21   : > { %273 = vst [vmem:[#allocation1 + $0x1] ss:$2 sm:$0xff] %v268_v5  ;;  %v658_v61 = vld [vmem:[%s826_s4] ss:$0 sm:$0xff]  ;;  %s620_s15 = sshll.u32 (%p757_p5), %s588_s21, 1 }
  0x22   : > { %s494_s16 = scalar_lea.vmem (%p757_p5), %s827_s5, %s620_s15 }
  0x23   : > { %308 = vmatpush.bf16.msra.mxu0 %v623_v3 }
  0x27   : > { %471 = vmatpush.bf16.msrb.mxu0 %v626_v52 }
  0x28   : > { %v274_v6 = vld.sshfl [vmem:[#allocation1] sm:$0xff pattern:$0x75316420] }
  0x29   : > { %v276_v7 = vpack.c.bf16 %v274_v6, %v274_v6 }
  0x2b   : > { %605 = vmatmul.msk.bf16.vlgmr.msra.gmra.mxu0 %vm297_vm0, %v276_v7 }
  0x2c   : > { %472 = vmatpush.bf16.msrb.mxu0 %v625_v53 }
  0xa8   : > { %v310_v9 = vpop.f32.mrf.mxu0 }
  0xa9   : > { %v311_v10 = vadd.f32 %v657_v8, %v310_v9 }
  0xab   : > { %v314_v11 = vmul.f32 0.25, %v311_v10  ;;  %v316_v12 = vpack.c.bf16 %v311_v10, %v311_v10 }
  0xad   : > { %v315_v13 = vpack.c.bf16 %v314_v11, %v314_v11  ;;  %v318_v14 = vunpack.c.l.b16 %v316_v12 }
  0xaf   : > { %v319_v15 = vpack.c.b16 %v318_v14, %v318_v14  ;;  %v378_v16 = vunpack.c.l.b16 %v315_v13 }
  0xb0   : > { %v312_v17 = vpop.f32.mrf.mxu0 }
  0xb1   : > { %320 = vrot.lane.b32.xlu0 %v319_v15, %s691_s23  ;;  %v379_v18 = vpack.c.b16 %v378_v16, %v378_v16 }
  0xb3   : > { %380 = vrot.lane.b32.xlu1 %v379_v18, %s692_s24 }
  0xb9   : > { %382 = vrot.lane.b32.xlu0 %v319_v15, %s693_s27 }
  0xc1   : > { %355 = vrot.lane.b32.xlu0 %v319_v15, %s694_s28 }
  0xc9   : > { %415 = vrot.lane.b32.xlu0 %v319_v15, %s695_s29 }
 0x123   : > { %v321_v19 = vpop.permute.xlu0 %320 }
 0x124   : > { %v327_v20 = vsel %vm322_vm1, %v321_v19, 0 }
 0x125   : > { %336 = vmatpush.bf16.xpose.msra.mxu1 %v327_v20  ;;  %v381_v23 = vpop.permute.xlu1 %380 }
 0x12b   : > { %v383_v21 = vpop.permute.xlu0 %382 }
 0x12c   : > { %606 = vmatmul.msk.bf16.vlgmr.msra.gmra.mxu1 %vm322_vm1, %v315_v13  ;;  %v388_v22 = vsel %vm322_vm1, %v383_v21, 0 }
 0x12d   : > { %397 = vmatpush.bf16.xpose.msra.mxu3 %v388_v22 }
 0x133   : > { %v356_v24 = vpop.permute.xlu0 %355 }
 0x134   : > { %608 = vmatmul.msk.bf16.vlgmr.msra.gmra.mxu3 %vm322_vm1, %v381_v23  ;;  %v362_v25 = vsel %vm360_vm2, %v356_v24, 0 }
 0x135   : > { %371 = vmatpush.bf16.msra.mxu2 %v362_v25 }
 0x13b   : > { %v416_v26 = vpop.permute.xlu0 %415 }
 0x13c   : > { %v421_v27 = vsel %vm360_vm2, %v416_v26, 0 }
 0x13d   : > { %430 = vmatpush.bf16.msrb.mxu2 %v421_v27 }
 0x1a9   : > { %v338_v28 = vpop.f32.mrf.mxu1 }
 0x1aa   : > { %v343_v29 = vsel %vm342_vm3, %v338_v28, -inf }
 0x1ab   : > { %344 = vmax.xlane.f32.xlu1 %v343_v29 }
 0x1b1   : > { %v340_v30 = vpop.f32.mrf.mxu1 }
 0x1b7   : > { %v399_v31 = vpop.f32.mrf.mxu3 }
 0x1b8   : > { %v403_v32 = vsel %vm342_vm3, %v399_v31, -inf }
 0x1b9   : > { %404 = vmax.xlane.f32.xlu2 %v403_v32 }
 0x1bf   : > { %v401_v33 = vpop.f32.mrf.mxu3 }
 0x21e   : > { %v345_v34 = vpop.xlane.xlu1 %344 }
 0x21f   : > { %v346_v35 = vsub.f32 %v338_v28, %v345_v34 }
 0x221   : > { %v347_v36 = vmul.f32 1.442695, %v346_v35 }
 0x223   : > { %659 = vpow2.f32 %v347_v36 }
 0x229   : > { %v660_v37 = vpop.eup %659 }
 0x22a   : > { %v349_v38 = vsel %vm342_vm3, %v660_v37, 0.0 }
 0x22b   : > { %350 = vadd.xlane.f32.xlu2 %v349_v38 }
 0x22c   : > { %v405_v39 = vpop.xlane.xlu2 %404 }
 0x22d   : > { %v406_v40 = vsub.f32 %v399_v31, %v405_v39 }
 0x22f   : > { %v407_v41 = vmul.f32 1.442695, %v406_v40 }
 0x231   : > { %661 = vpow2.f32 %v407_v41 }
 0x237   : > { %v662_v42 = vpop.eup %661 }
 0x238   : > { %v409_v43 = vsel %vm342_vm3, %v662_v42, 0.0 }
 0x239   : > { %410 = vadd.xlane.f32.xlu2 %v409_v43 }
 0x29e   : > { %v351_v44 = vpop.xlane.xlu2 %350 }
 0x29f   : > { %663 = vrcp.f32 %v351_v44 }
 0x2a5   : > { %v664_v45 = vpop.eup %663 }
 0x2a6   : > { %v353_v46 = vmul.f32 %v664_v45, %v660_v37 }
 0x2a8   : > { %v354_v47 = vpack.c.bf16 %v353_v46, %v353_v46 }
 0x2aa   : > { %607 = vmatmul.msk.bf16.vlgmr.msra.gmra.mxu2 %vm342_vm3, %v354_v47 }
 0x2ac   : > { %v411_v48 = vpop.xlane.xlu2 %410 }
 0x2ad   : > { %665 = vrcp.f32 %v411_v48 }
 0x2b3   : > { %v666_v49 = vpop.eup %665 }
 0x2b4   : > { %v413_v50 = vmul.f32 %v666_v49, %v662_v42 }
 0x2b6   : > { %v414_v51 = vpack.c.bf16 %v413_v50, %v413_v50 }
 0x2ba   : > { %609 = vmatmul.msk.bf16.vlgmr.msrb.gmra.mxu2 %vm342_vm3, %v414_v51 }
 0x32d   : > { %v373_v54 = vpop.f32.mrf.mxu2 }
 0x335   : > { %v375_v55 = vpop.f32.mrf.mxu2 }
 0x33d   : > { %v432_v56 = vpop.f32.mrf.mxu2 }
 0x33e   : > { %437 = vrot.lane.b32.xlu2 %v432_v56, %s696_s9 }
 0x345   : > { %v434_v57 = vpop.f32.mrf.mxu2 }
 0x398   : > { %v438_v58 = vpop.permute.xlu2 %437 }
 0x399   : > { %v440_v59 = vsel %vm322_vm1, %v373_v54, %v438_v58 }
 0x39a   : > { %v441_v60 = vpack.c.bf16 %v440_v59, %v440_v59 }
 0x39c   : > { %618 = vmatmul.msk.bf16.vlgmr.msrb.gmra.mxu0 %vm297_vm0, %v441_v60 }
 0x419   : > { %v474_v62 = vpop.f32.mrf.mxu0 }
 0x41a   : > { %v475_v63 = vadd.f32 %v658_v61, %v474_v62 }
 0x41c   : > { %v479_v0 = vrot.slane %v475_v63, 4  ;;  %v481_v1 = vpack.c.bf16 %v475_v63, %v475_v63 }
 0x41d   : > { %492 = sbr.rel (!%p757_p5) target bundleno = 1065 (0x429), region = 85 }
 0x41e   : > { %v482_v2 = vpack.c.bf16 %v479_v0, %v479_v0  ;;  %484 = vst.msk [vmem:[%s265_s14] sm:$0x3] %vm483_vm4, %v481_v1 }
 0x420   : > { %485 = vst.msk [vmem:[%s265_s14 + $0x2] sm:$0x3] %vm483_vm4, %v482_v2 }
 0x421   : > { %v476_v3 = vpop.f32.mrf.mxu0 }
 0x425   : > { %v511_v4 = vld [vmem:[%s265_s14] sm:$0x3] }
 0x426   : > { %512 = vst [vmem:[%s494_s16] sm:$0x3] %v511_v4 }
 0x427   : > { %v513_v5 = vld [vmem:[%s265_s14 + $0x2] sm:$0x3] }
 0x428   : > { %514 = vst [vmem:[%s494_s16 + $0x8] sm:$0x3] %v513_v5 }
 0x429 PF: > { %p12_p10 = scmp.ge.s32.totalorder %s744_s22, 6   ;;  %s829_s18 = smov %s685_s19 }
 0x42a   : > { %s830_s19 = smov %s755_s25  ;;  %s831_s20 = smov %s744_s22 }
 0x42b   :  { %14 = sbr.rel (!%p12_p10) target bundleno = 2 (0x2), region = 151 }

// kernel: factorized_forward_pallas.5
= control target key start
LH: loop header
LB: loop body
LE: loop exit
PB: predicated region body
PF: predicated region fallthrough
CT: control target
= control target key end

     0   :  { %s882_s0 = inlined_call_operand.vmem [shape: bf16[32,32], index: 0, kind: input, shape index: {}]   ;;  %s883_s1 = inlined_call_operand.vmem [shape: bf16[32,32], index: 1, kind: input, shape index: {}]   ;;  %s884_s2 = inlined_call_operand.vmem [shape: f32[32,32], index: 2, kind: input, shape index: {}]   ;;  %s885_s3 = inlined_call_operand.vmem [shape: bf16[32,32], index: 3, kind: input, shape index: {}]   ;;  %s886_s4 = inlined_call_operand.vmem [shape: bf16[32,32], index: 4, kind: input, shape index: {}]   ;;  %s887_s5 = inlined_call_operand.vmem [shape: f32[1,32], index: 5, kind: input, shape index: {}]   ;;  %s888_s6 = inlined_call_operand.vmem [shape: f32[1,32], index: 6, kind: input, shape index: {}]   ;;  %s889_s7 = inlined_call_operand.vmem [shape: f32[1,32], index: 7, kind: input, shape index: {}]   ;;  %s890_s8 = inlined_call_operand.vmem [shape: bf16[32,64], index: 8, kind: input, shape index: {}]   ;;  %s891_s9 = inlined_call_operand.vmem [shape: f32[1,64], index: 9, kind: input, shape index: {}]   ;;  %s892_s10 = inlined_call_operand.vmem [shape: bf16[64,32], index: 10, kind: input, shape index: {}]   ;;  %s893_s11 = inlined_call_operand.vmem [shape: f32[1,32], index: 11, kind: input, shape index: {}]   ;;  %s894_s12 = inlined_call_operand.vmem [shape: f32[1,32], index: 12, kind: input, shape index: {}]   ;;  %s895_s13 = inlined_call_operand.vmem [shape: f32[1,32], index: 13, kind: input, shape index: {}]   ;;  %s896_s14 = inlined_call_operand.hbm [shape: f32[32,32], index: 14, kind: output, shape index: {}]  }
   0x1   :  { %v599_v0 = vld [vmem:[%s886_s4 + $0x8] sm:$0xff]  ;;  %v598_v2 = vld [vmem:[%s886_s4] sm:$0xff] }
   0x2   :  { %v597_v1 = vld [vmem:[%s885_s3 + $0x8] sm:$0xff]  ;;  %104 = vmatpush.bf16.msra.mxu0 %v599_v0  ;;  %v596_v3 = vld [vmem:[%s885_s3] sm:$0xff] }
   0x3   :  { %151 = vmatpush.bf16.msra.mxu1 %v597_v1  ;;  %v594_v4 = vld [vmem:[%s883_s1] sm:$0xff] }
   0x4   :  { %v592_v5 = vld [vmem:[%s882_s0] sm:$0xff] }
   0x5   :  { %19 = vsyncpa [#allocation3], 0  ;;  %vm91_vm0 = vcmask 261120   ;;  %v595_v6 = vld [vmem:[%s883_s1 + $0x8] sm:$0xff]  ;;  %v610_v8 = vld [vmem:[%s887_s5] ss:$0 sm:$0xff] }
   0x6   :  { %105 = vmatpush.bf16.msra.mxu0 %v598_v2  ;;  %v593_v7 = vld [vmem:[%s882_s0 + $0x8] sm:$0xff]  ;;  %v661_v29 = vmov 32.0   ;;  %v600_v59 = vld [vmem:[%s890_s8] sm:$0xff]  ;;  %vm372_vm14 = vcmask 523264   ;;  %s516_s15 = sshll.u32 %s896_s14, 4  ;;  %s663_s16 = smov 128   ;;  %s517_s15 = int_to_ptr.hbm [resolvable:$true] %s516_s15 }
   0x7   :  { %152 = vmatpush.bf16.msra.mxu1 %v596_v3  ;;  %617 = vrcp.f32 %v661_v29  ;;  %v601_v56 = vld [vmem:[%s890_s8 + $0x8] sm:$0xff] }
   0x8   :  { %317 = vmatpush.bf16.msra.mxu2 %v601_v56  ;;  %v613_v56 = vld [vmem:[%s891_s9] ss:$0 sm:$0xff] }
   0x9   :  { %544 = vmatmul.msk.bf16.vlgmr.msra.gmra.mxu0 %vm91_vm0, %v594_v4 }
   0xa   :  { %562 = vmatmul.msk.bf16.vlgmr.msra.gmra.mxu1 %vm91_vm0, %v592_v5 }
   0xc   :  { %318 = vmatpush.bf16.msra.mxu2 %v600_v59 }
   0xd   :  { %v618_v30 = vpop.eup %617 }
   0xe   :  { %v185_v31 = vmul.f32 32.0, %v618_v30  ;;  %vm189_vm1 = vweird.f32 %v618_v30 }
  0x10   :  { %v186_v32 = vsub.f32 1.0, %v185_v31 }
  0x12   :  { %v187_v33 = vmul.f32 %v618_v30, %v186_v32 }
  0x14   :  { %v188_v34 = vadd.f32 %v618_v30, %v187_v33 }
  0x16   :  { %v775_v35 = vsel %vm189_vm1, %v618_v30, %v188_v34 }
  0x19   :  { %545 = vmatmul.msk.bf16.gmra.mxu0 %vm91_vm0, %v595_v6 }
  0x1a   :  { %563 = vmatmul.msk.bf16.gmra.mxu1 %vm91_vm0, %v593_v7 }
  0x86   :  { %v107_v9 = vpop.f32.mrf.mxu0 }
  0x87   :  { %v154_v10 = vpop.f32.mrf.mxu1 }
  0x88   :  { %v155_v11 = vadd.f32 %v154_v10, %v107_v9 }
  0x8a   :  { %v168_v12 = vadd.f32 %v610_v8, %v155_v11 }
  0x8c   :  { %v172_v13 = vsel %vm91_vm0, %v168_v12, 0.0 }
  0x8d   :  { %173 = vadd.xlane.f32.xlu0 %v172_v13 }
  0x8e   :  { %v109_v14 = vpop.f32.mrf.mxu0 }
  0x8f   :  { %v156_v15 = vpop.f32.mrf.mxu1 }
  0x90   :  { %v157_v16 = vadd.f32 %v156_v15, %v109_v14 }
  0x92   :  { %v169_v17 = vadd.f32 %v610_v8, %v157_v16 }
  0x94   :  { %v175_v18 = vsel %vm91_vm0, %v169_v17, 0.0 }
  0x95   :  { %176 = vadd.xlane.f32.xlu0 %v175_v18 }
  0x96   :  { %v112_v19 = vpop.f32.mrf.mxu0 }
  0x97   :  { %v159_v20 = vpop.f32.mrf.mxu1 }
  0x98   :  { %v160_v21 = vadd.f32 %v159_v20, %v112_v19  ;;  %v611_v20 = vld [vmem:[%s888_s6] ss:$0 sm:$0xff]  ;;  %s664_s6 = smov 8  }
  0x9a   :  { %v170_v22 = vadd.f32 %v610_v8, %v160_v21 }
  0x9c   :  { %v178_v23 = vsel %vm91_vm0, %v170_v22, 0.0 }
  0x9d   :  { %179 = vadd.xlane.f32.xlu1 %v178_v23 }
  0x9e   :  { %v114_v24 = vpop.f32.mrf.mxu0 }
  0x9f   :  { %v161_v25 = vpop.f32.mrf.mxu1 }
  0xa0   :  { %v162_v26 = vadd.f32 %v161_v25, %v114_v24 }
  0xa2   :  { %v171_v27 = vadd.f32 %v610_v8, %v162_v26 }
  0xa4   :  { %v181_v28 = vsel %vm91_vm0, %v171_v27, 0.0 }
  0xa5   :  { %182 = vadd.xlane.f32.xlu1 %v181_v28 }
 0x100   :  { %v174_v36 = vpop.xlane.xlu0 %173 }
 0x101   :  { %v191_v37 = vmul.f32 %v775_v35, %v174_v36 }
 0x103   :  { %v195_v38 = vsub.f32 %v168_v12, %v191_v37 }
 0x105   :  { %v199_v39 = vmul.f32 %v195_v38, %v195_v38 }
 0x107   :  { %v203_v40 = vsel %vm91_vm0, %v199_v39, 0.0 }
 0x108   :  { %204 = vadd.xlane.f32.xlu2 %v203_v40  ;;  %v177_v41 = vpop.xlane.xlu0 %176 }
 0x109   :  { %v192_v42 = vmul.f32 %v775_v35, %v177_v41 }
 0x10b   :  { %v196_v43 = vsub.f32 %v169_v17, %v192_v42 }
 0x10d   :  { %v200_v44 = vmul.f32 %v196_v43, %v196_v43 }
 0x10f   :  { %v206_v45 = vsel %vm91_vm0, %v200_v44, 0.0 }
 0x110   :  { %v180_v46 = vpop.xlane.xlu1 %179  ;;  %207 = vadd.xlane.f32.xlu2 %v206_v45 }
 0x111   :  { %v193_v47 = vmul.f32 %v775_v35, %v180_v46 }
 0x113   :  { %v782_v48 = vsub.f32 %v170_v22, %v193_v47 }
 0x115   :  { %v201_v49 = vmul.f32 %v782_v48, %v782_v48 }
 0x117   :  { %v209_v50 = vsel %vm91_vm0, %v201_v49, 0.0 }
 0x118   :  { %v183_v51 = vpop.xlane.xlu1 %182  ;;  %210 = vadd.xlane.f32.xlu0 %v209_v50 }
 0x119   :  { %v194_v52 = vmul.f32 %v775_v35, %v183_v51 }
 0x11b   :  { %v788_v53 = vsub.f32 %v171_v27, %v194_v52  ;;  %v612_v27 = vld [vmem:[%s889_s7] ss:$0 sm:$0xff]  ;;  %v605_v52 = vld [vmem:[%s892_s10 + $0x18] sm:$0xff] }
 0x11c   :  { %383 = vmatpush.bf16.msra.mxu3 %v605_v52 }
 0x11d   :  { %v202_v54 = vmul.f32 %v788_v53, %v788_v53 }
 0x11f   :  { %v212_v55 = vsel %vm91_vm0, %v202_v54, 0.0  ;;  %v602_v54 = vld [vmem:[%s892_s10] sm:$0xff] }
 0x120   :  { %213 = vadd.xlane.f32.xlu1 %v212_v55 }
 0x17b   :  { %v205_v57 = vpop.xlane.xlu2 %204 }
 0x17c   :  { %v215_v58 = vmul.f32 %v205_v57, %v775_v35 }
 0x17e   :  { %v219_v60 = vadd.f32 1e-05, %v215_v58 }
 0x180   :  { %619 = vrsqrt.f32 %v219_v60  ;;  %vm229_vm3 = vweird.f32 %v219_v60 }
 0x183   :  { %v208_v61 = vpop.xlane.xlu2 %207 }
 0x184   :  { %v216_v62 = vmul.f32 %v208_v61, %v775_v35 }
 0x186   :  { %v620_v63 = vpop.eup %619  ;;  %v220_v0 = vadd.f32 1e-05, %v216_v62 }
 0x187   :  { %v224_v1 = vmul.f32 %v620_v63, %v219_v60  ;;  %vm230_vm2 = vweird.f32 %v620_v63 }
 0x188   :  { %621 = vrsqrt.f32 %v220_v0  ;;  %vm231_vm4 = vmor %vm229_vm3, %vm230_vm2  ;;  %vm239_vm6 = vweird.f32 %v220_v0 }
 0x189   :  { %v225_v2 = vmul.f32 %v620_v63, %v224_v1 }
 0x18b   :  { %v226_v3 = vmul.f32 0.5, %v225_v2  ;;  %v211_v4 = vpop.xlane.xlu0 %210 }
 0x18c   :  { %v217_v5 = vmul.f32 %v211_v4, %v775_v35 }
 0x18d   :  { %v227_v6 = vsub.f32 1.5, %v226_v3 }
 0x18e   :  { %v622_v7 = vpop.eup %621  ;;  %v221_v8 = vadd.f32 1e-05, %v217_v5 }
 0x18f   :  { %v228_v9 = vmul.f32 %v620_v63, %v227_v6  ;;  %v234_v10 = vmul.f32 %v622_v7, %v220_v0  ;;  %vm240_vm5 = vweird.f32 %v622_v7  ;;  %v614_v6 = vld [vmem:[%s893_s11] ss:$0 sm:$0xff] }
 0x190   :  { %623 = vrsqrt.f32 %v221_v8  ;;  %vm241_vm7 = vmor %vm239_vm6, %vm240_vm5  ;;  %vm249_vm9 = vweird.f32 %v221_v8 }
 0x191   :  { %v235_v11 = vmul.f32 %v622_v7, %v234_v10  ;;  %v232_v12 = vsel %vm231_vm4, %v620_v63, %v228_v9 }
 0x192   :  { %v263_v18 = vmul.f32 %v232_v12, %v195_v38 }
 0x193   :  { %v236_v13 = vmul.f32 0.5, %v235_v11  ;;  %v214_v14 = vpop.xlane.xlu1 %213 }
 0x194   :  { %v218_v15 = vmul.f32 %v214_v14, %v775_v35  ;;  %v271_v26 = vmul.f32 %v611_v20, %v263_v18  ;;  %v59_v18 = vld [vmem:[%s884_s2 + $0x10] sm:$0xff] }
 0x195   :  { %v237_v16 = vsub.f32 1.5, %v236_v13  ;;  %v58_v13 = vld [vmem:[%s884_s2 + $0x8] sm:$0xff] }
 0x196   :  { %v624_v17 = vpop.eup %623  ;;  %v222_v19 = vadd.f32 1e-05, %v218_v15  ;;  %v279_v32 = vadd.f32 %v612_v27, %v271_v26 }
 0x197   :  { %v238_v21 = vmul.f32 %v622_v7, %v237_v16  ;;  %v244_v22 = vmul.f32 %v624_v17, %v221_v8  ;;  %vm250_vm8 = vweird.f32 %v624_v17  ;;  %v57_v8 = vld [vmem:[%s884_s2] sm:$0xff] }
 0x198   :  { %625 = vrsqrt.f32 %v222_v19  ;;  %vm251_vm10 = vmor %vm249_vm9, %vm250_vm8  ;;  %vm259_vm12 = vweird.f32 %v222_v19 }
 0x199   :  { %v242_v23 = vsel %vm241_vm7, %v622_v7, %v238_v21  ;;  %v245_v24 = vmul.f32 %v624_v17, %v244_v22 }
 0x19a   :  { %v264_v25 = vmul.f32 %v242_v23, %v196_v43  ;;  %v60_v23 = vld [vmem:[%s884_s2 + $0x18] sm:$0xff] }
 0x19b   :  { %v246_v28 = vmul.f32 0.5, %v245_v24 }
 0x19c   :  { %v272_v29 = vmul.f32 %v611_v20, %v264_v25 }
 0x19d   :  { %v247_v30 = vsub.f32 1.5, %v246_v28 }
 0x19e   :  { %v626_v31 = vpop.eup %625  ;;  %v280_v33 = vadd.f32 %v612_v27, %v272_v29 }
 0x19f   :  { %v248_v34 = vmul.f32 %v624_v17, %v247_v30  ;;  %v254_v36 = vmul.f32 %v626_v31, %v222_v19  ;;  %vm260_vm11 = vweird.f32 %v626_v31 }
 0x1a0   :  { %v283_v37 = vpack.c.bf16 %v280_v33, %v279_v32  ;;  %vm261_vm13 = vmor %vm259_vm12, %vm260_vm11 }
 0x1a1   :  { %v255_v38 = vmul.f32 %v626_v31, %v254_v36  ;;  %v252_v39 = vsel %vm251_vm10, %v624_v17, %v248_v34 }
 0x1a2   :  { %572 = vmatmul.msk.bf16.vlgmr.msra.gmra.mxu2 %vm91_vm0, %v283_v37  ;;  %v265_v42 = vmul.f32 %v252_v39, %v782_v48  ;;  %v604_v48 = vld [vmem:[%s892_s10 + $0x10] sm:$0xff] }
 0x1a3   :  { %v256_v40 = vmul.f32 0.5, %v255_v38  ;;  %384 = vmatpush.bf16.msra.mxu3 %v604_v48 }
 0x1a4   :  { %v273_v46 = vmul.f32 %v611_v20, %v265_v42 }
 0x1a5   :  { %v257_v41 = vsub.f32 1.5, %v256_v40 }
 0x1a6   :  { %v281_v49 = vadd.f32 %v612_v27, %v273_v46 }
 0x1a7   :  { %v258_v43 = vmul.f32 %v626_v31, %v257_v41 }
 0x1a9   :  { %v262_v44 = vsel %vm261_vm13, %v626_v31, %v258_v43 }
 0x1aa   :  { %v266_v45 = vmul.f32 %v262_v44, %v788_v53  ;;  %v603_v53 = vld [vmem:[%s892_s10 + $0x8] sm:$0xff] }
 0x1ab   :  { %385 = vmatpush.bf16.msra.mxu3 %v603_v53 }
 0x1ac   :  { %v274_v47 = vmul.f32 %v611_v20, %v266_v45 }
 0x1ae   :  { %v282_v50 = vadd.f32 %v612_v27, %v274_v47 }
 0x1af   :  { %386 = vmatpush.bf16.msra.mxu3 %v602_v54 }
 0x1b0   :  { %v284_v51 = vpack.c.bf16 %v282_v50, %v281_v49 }
 0x1b2   :  { %573 = vmatmul.msk.bf16.gmra.mxu2 %vm91_vm0, %v284_v51 }
 0x225   :  { %v320_v55 = vpop.f32.mrf.mxu2 }
 0x226   :  { %v321_v57 = vadd.f32 %v613_v56, %v320_v55 }
 0x228   :  { %v330_v60 = vmax.f32 %v321_v57, 0.0 }
 0x22d   :  { %v322_v58 = vpop.f32.mrf.mxu2 }
 0x22e   :  { %v323_v59 = vadd.f32 %v613_v56, %v322_v58 }
 0x230   :  { %v331_v61 = vmax.f32 %v323_v59, 0.0 }
 0x232   :  { %v334_v62 = vpack.c.bf16 %v331_v61, %v330_v60 }
 0x234   :  { %590 = vmatmul.msk.bf16.vlgmr.msra.gmra.mxu3 %vm372_vm14, %v334_v62 }
 0x235   :  { %v325_v63 = vpop.f32.mrf.mxu2 }
 0x236   :  { %v326_v0 = vadd.f32 %v613_v56, %v325_v63 }
 0x238   :  { %v332_v3 = vmax.f32 %v326_v0, 0.0 }
 0x23d   :  { %v327_v1 = vpop.f32.mrf.mxu2 }
 0x23e   :  { %v328_v2 = vadd.f32 %v613_v56, %v327_v1  ;;  %v615_v1 = vld [vmem:[%s894_s12] ss:$0 sm:$0xff]  ;;  %s662_s12 = smov [#allocation2]  }
 0x240   :  { %v333_v4 = vmax.f32 %v328_v2, 0.0 }
 0x242   :  { %v335_v5 = vpack.c.bf16 %v333_v4, %v332_v3  ;;  %v616_v4 = vld [vmem:[%s895_s13] ss:$0 sm:$0xff]  ;;  %s514_s13 = sshll.u32 %s662_s12, 4  ;;  %s515_s13 = int_to_ptr.vmem [resolvable:$true] %s514_s13 }
 0x244   :  { %591 = vmatmul.msk.bf16.gmra.mxu3 %vm372_vm14, %v335_v5 }
 0x2b7   :  { %v388_v7 = vpop.f32.mrf.mxu3 }
 0x2b8   :  { %v389_v9 = vadd.f32 %v614_v6, %v388_v7 }
 0x2ba   :  { %v398_v10 = vadd.f32 %v389_v9, %v57_v8 }
 0x2bc   :  { %v402_v11 = vsel %vm91_vm0, %v398_v10, 0.0 }
 0x2bd   :  { %403 = vadd.xlane.f32.xlu2 %v402_v11 }
 0x2bf   :  { %v390_v12 = vpop.f32.mrf.mxu3 }
 0x2c0   :  { %v391_v14 = vadd.f32 %v614_v6, %v390_v12 }
 0x2c2   :  { %v399_v15 = vadd.f32 %v391_v14, %v58_v13 }
 0x2c4   :  { %v405_v16 = vsel %vm91_vm0, %v399_v15, 0.0 }
 0x2c5   :  { %406 = vadd.xlane.f32.xlu0 %v405_v16 }
 0x2c7   :  { %v393_v17 = vpop.f32.mrf.mxu3 }
 0x2c8   :  { %v394_v19 = vadd.f32 %v614_v6, %v393_v17 }
 0x2ca   :  { %v400_v20 = vadd.f32 %v394_v19, %v59_v18 }
 0x2cc   :  { %v408_v21 = vsel %vm91_vm0, %v400_v20, 0.0 }
 0x2cd   :  { %409 = vadd.xlane.f32.xlu1 %v408_v21 }
 0x2cf   :  { %v395_v22 = vpop.f32.mrf.mxu3 }
 0x2d0   :  { %v396_v24 = vadd.f32 %v614_v6, %v395_v22 }
 0x2d2   :  { %v401_v25 = vadd.f32 %v396_v24, %v60_v23 }
 0x2d4   :  { %v411_v26 = vsel %vm91_vm0, %v401_v25, 0.0 }
 0x2d5   :  { %412 = vadd.xlane.f32.xlu2 %v411_v26 }
 0x330   :  { %v404_v27 = vpop.xlane.xlu2 %403 }
 0x331   :  { %v414_v28 = vmul.f32 %v404_v27, %v775_v35 }
 0x333   :  { %v418_v29 = vsub.f32 %v398_v10, %v414_v28 }
 0x335   :  { %v422_v30 = vmul.f32 %v418_v29, %v418_v29 }
 0x337   :  { %v426_v31 = vsel %vm91_vm0, %v422_v30, 0.0 }
 0x338   :  { %427 = vadd.xlane.f32.xlu0 %v426_v31  ;;  %v407_v32 = vpop.xlane.xlu0 %406 }
 0x339   :  { %v415_v33 = vmul.f32 %v407_v32, %v775_v35 }
 0x33b   :  { %v419_v34 = vsub.f32 %v399_v15, %v415_v33 }
 0x33d   :  { %v423_v36 = vmul.f32 %v419_v34, %v419_v34 }
 0x33f   :  { %v429_v37 = vsel %vm91_vm0, %v423_v36, 0.0 }
 0x340   :  { %v410_v38 = vpop.xlane.xlu1 %409  ;;  %430 = vadd.xlane.f32.xlu1 %v429_v37 }
 0x341   :  { %v416_v39 = vmul.f32 %v410_v38, %v775_v35 }
 0x343   :  { %v852_v40 = vsub.f32 %v400_v20, %v416_v39 }
 0x345   :  { %v424_v41 = vmul.f32 %v852_v40, %v852_v40 }
 0x347   :  { %v432_v42 = vsel %vm91_vm0, %v424_v41, 0.0 }
 0x348   :  { %v413_v43 = vpop.xlane.xlu2 %412  ;;  %433 = vadd.xlane.f32.xlu2 %v432_v42 }
 0x349   :  { %v417_v44 = vmul.f32 %v413_v43, %v775_v35 }
 0x34b   :  { %v858_v45 = vsub.f32 %v401_v25, %v417_v44 }
 0x34d   :  { %v425_v46 = vmul.f32 %v858_v45, %v858_v45 }
 0x34f   :  { %v435_v47 = vsel %vm91_vm0, %v425_v46, 0.0 }
 0x350   :  { %436 = vadd.xlane.f32.xlu0 %v435_v47 }
 0x3ab   :  { %v428_v49 = vpop.xlane.xlu0 %427 }
 0x3ac   :  { %v438_v50 = vmul.f32 %v428_v49, %v775_v35 }
 0x3ae   :  { %v442_v51 = vadd.f32 1e-05, %v438_v50 }
 0x3b0   :  { %627 = vrsqrt.f32 %v442_v51  ;;  %vm452_vm1 = vweird.f32 %v442_v51 }
 0x3b3   :  { %v431_v52 = vpop.xlane.xlu1 %430 }
 0x3b4   :  { %v439_v48 = vmul.f32 %v431_v52, %v775_v35 }
 0x3b6   :  { %v628_v53 = vpop.eup %627  ;;  %v443_v54 = vadd.f32 1e-05, %v439_v48 }
 0x3b7   :  { %v447_v55 = vmul.f32 %v628_v53, %v442_v51  ;;  %vm453_vm15 = vweird.f32 %v628_v53 }
 0x3b8   :  { %629 = vrsqrt.f32 %v443_v54  ;;  %vm454_vm2 = vmor %vm452_vm1, %vm453_vm15  ;;  %vm462_vm4 = vweird.f32 %v443_v54 }
 0x3b9   :  { %v448_v56 = vmul.f32 %v628_v53, %v447_v55 }
 0x3bb   :  { %v449_v57 = vmul.f32 0.5, %v448_v56  ;;  %v434_v58 = vpop.xlane.xlu2 %433 }
 0x3bc   :  { %v440_v59 = vmul.f32 %v434_v58, %v775_v35 }
 0x3bd   :  { %v450_v60 = vsub.f32 1.5, %v449_v57 }
 0x3be   :  { %v630_v61 = vpop.eup %629  ;;  %v444_v62 = vadd.f32 1e-05, %v440_v59 }
 0x3bf   :  { %v451_v63 = vmul.f32 %v628_v53, %v450_v60  ;;  %v457_v0 = vmul.f32 %v630_v61, %v443_v54  ;;  %vm463_vm3 = vweird.f32 %v630_v61 }
 0x3c0   :  { %631 = vrsqrt.f32 %v444_v62  ;;  %vm464_vm5 = vmor %vm462_vm4, %vm463_vm3  ;;  %vm472_vm7 = vweird.f32 %v444_v62 }
 0x3c1   :  { %v455_v2 = vsel %vm454_vm2, %v628_v53, %v451_v63  ;;  %v458_v3 = vmul.f32 %v630_v61, %v457_v0 }
 0x3c2   :  { %v486_v5 = vmul.f32 %v455_v2, %v418_v29 }
 0x3c3   :  { %v459_v6 = vmul.f32 0.5, %v458_v3  ;;  %v437_v7 = vpop.xlane.xlu0 %436 }
 0x3c4   :  { %v494_v8 = vmul.f32 %v615_v1, %v486_v5  ;;  %v441_v9 = vmul.f32 %v437_v7, %v775_v35 }
 0x3c5   :  { %v460_v10 = vsub.f32 1.5, %v459_v6 }
 0x3c6   :  { %v632_v11 = vpop.eup %631  ;;  %v502_v12 = vadd.f32 %v616_v4, %v494_v8  ;;  %v445_v13 = vadd.f32 1e-05, %v441_v9 }
 0x3c7   :  { %v461_v14 = vmul.f32 %v630_v61, %v460_v10  ;;  %v467_v15 = vmul.f32 %v632_v11, %v444_v62  ;;  %vm473_vm6 = vweird.f32 %v632_v11 }
 0x3c8   :  { %506 = vst.msk [vmem:[#allocation2] sm:$0xff] %vm91_vm0, %v502_v12  ;;  %633 = vrsqrt.f32 %v445_v13  ;;  %vm474_vm8 = vmor %vm472_vm7, %vm473_vm6  ;;  %vm482_vm10 = vweird.f32 %v445_v13 }
 0x3c9   :  { %v465_v16 = vsel %vm464_vm5, %v630_v61, %v461_v14  ;;  %v468_v17 = vmul.f32 %v632_v11, %v467_v15 }
 0x3ca   :  { %v487_v18 = vmul.f32 %v465_v16, %v419_v34 }
 0x3cb   :  { %v469_v19 = vmul.f32 0.5, %v468_v17 }
 0x3cc   :  { %v495_v20 = vmul.f32 %v615_v1, %v487_v18 }
 0x3cd   :  { %v470_v21 = vsub.f32 1.5, %v469_v19 }
 0x3ce   :  { %v634_v35 = vpop.eup %633  ;;  %v503_v22 = vadd.f32 %v616_v4, %v495_v20 }
 0x3cf   :  { %v471_v23 = vmul.f32 %v632_v11, %v470_v21  ;;  %v477_v24 = vmul.f32 %v634_v35, %v445_v13  ;;  %vm483_vm9 = vweird.f32 %v634_v35 }
 0x3d0   :  { %507 = vst.msk [vmem:[#allocation2 + $0x8] sm:$0xff] %vm91_vm0, %v503_v22  ;;  %vm484_vm11 = vmor %vm482_vm10, %vm483_vm9 }
 0x3d1   :  { %v475_v25 = vsel %vm474_vm8, %v632_v11, %v471_v23  ;;  %v478_v26 = vmul.f32 %v634_v35, %v477_v24 }
 0x3d2   :  { %v488_v27 = vmul.f32 %v475_v25, %v852_v40 }
 0x3d3   :  { %v479_v28 = vmul.f32 0.5, %v478_v26 }
 0x3d4   :  { %v496_v29 = vmul.f32 %v615_v1, %v488_v27 }
 0x3d5   :  { %v480_v30 = vsub.f32 1.5, %v479_v28 }
 0x3d6   :  { %v504_v31 = vadd.f32 %v616_v4, %v496_v29 }
 0x3d7   :  { %v481_v32 = vmul.f32 %v634_v35, %v480_v30 }
 0x3d8   :  { %508 = vst.msk [vmem:[#allocation2 + $0x10] sm:$0xff] %vm91_vm0, %v504_v31 }
 0x3d9   :  { %v485_v33 = vsel %vm484_vm11, %v634_v35, %v481_v32 }
 0x3da   :  { %v489_v34 = vmul.f32 %v485_v33, %v858_v45 }
 0x3dc   :  { %v497_v36 = vmul.f32 %v615_v1, %v489_v34 }
 0x3de   :  { %v505_v37 = vadd.f32 %v616_v4, %v497_v36 }
 0x3e0   :  { %509 = vst.msk [vmem:[#allocation2 + $0x18] sm:$0xff] %vm91_vm0, %v505_v37 }
 0x3e1   :  { %522 = dma.vmem_to_hbm [thread:$0]  %s515_s13, 512, %s517_s15, [#allocation3], %s663_s16, %s663_s16, %s664_s6  }
 0x3e2   :  { %659 = dma.done.wait [#allocation3], 512  }
 0x3e3   :  { %660 = vsyncadd [#allocation3], 4294966784 }
 0x3e4   :  { %527 = vsyncpa [#allocation3], 1 }

// kernel: factorized_forward_pallas.3
= control target key start
LH: loop header
LB: loop body
LE: loop exit
PB: predicated region body
PF: predicated region fallthrough
CT: control target
= control target key end

     0   :  { %vm55_vm0 = vcmask 261120   ;;  %vm244_vm1 = vcmask 1043456   ;;  %vm98_vm2 = vcmask 130048   ;;  %vm190_vm3 = vcmask 64512   ;;  %s743_s28 = smov 112   ;;  %s744_s29 = smov 48   ;;  %s920_s1 = inlined_call_operand.vmem [shape: bf16[32,96], index: 1, kind: input, shape index: {}]   ;;  %s921_s2 = inlined_call_operand.vmem [shape: f32[1,96], index: 2, kind: input, shape index: {}]   ;;  %s922_s0 = inlined_call_operand.vmem [shape: bf16[4,8,32], index: 0, kind: input, shape index: {}]   ;;  %s923_s3 = inlined_call_operand.vmem [shape: bf16[32,32], index: 3, kind: input, shape index: {}]   ;;  %s924_s4 = inlined_call_operand.vmem [shape: f32[1,32], index: 4, kind: input, shape index: {}]   ;;  %s925_s5 = inlined_call_operand.vmem [shape: bf16[4,8,32], index: 5, kind: output, shape index: {}]  }
   0x1   :  { %v687_v0 = vld [vmem:[%s920_s1 + $0x8] sm:$0xff]  ;;  %v686_v1 = vld [vmem:[%s920_s1] sm:$0xff]  ;;  %s740_s1 = smov 64   ;;  %s745_s7 = smov 16   ;;  %vm631_vm4 = vcmask 257024  }
   0x2   :  { %68 = vmatpush.bf16.msra.mxu0 %v687_v0  ;;  %v684_v2 = vld [vmem:[%s922_s0] sm:$0xff]  ;;  %v685_v3 = vld [vmem:[%s922_s0 + $0x8] sm:$0xff]  ;;  %s741_s0 = smov 96  }
   0x3   :  { %v706_v4 = vld [vmem:[%s921_s2] ss:$0 sm:$0xff]  ;;  %s742_s2 = smov 80  }
   0x6   :  { %69 = vmatpush.bf16.msra.mxu0 %v686_v1 }
   0x9   :  { %656 = vmatmul.msk.bf16.vlgmr.msra.gmra.mxu0 %vm55_vm0, %v684_v2 }
  0x19   :  { %657 = vmatmul.msk.bf16.gmra.mxu0 %vm55_vm0, %v685_v3 }
  0x86   :  { %v71_v5 = vpop.f32.mrf.mxu0 }
  0x87   :  { %v72_v6 = vadd.f32 %v706_v4, %v71_v5 }
  0x89   :  { %v89_v7 = vpack.c.bf16 %v72_v6, %v72_v6  ;;  %v81_v35 = vmul.f32 0.25, %v72_v6 }
  0x8b   :  { %v94_v8 = vunpack.c.l.b16 %v89_v7  ;;  %v85_v36 = vpack.c.bf16 %v81_v35, %v81_v35 }
  0x8d   :  { %v793_v9 = vpack.c.b16 %v94_v8, %v94_v8  ;;  %v325_v55 = vunpack.c.l.b16 %v85_v36 }
  0x8e   :  { %v73_v10 = vpop.f32.mrf.mxu0 }
  0x8f   :  { %v74_v11 = vadd.f32 %v706_v4, %v73_v10  ;;  %239 = vrot.lane.b32.xlu2 %v793_v9, %s740_s1  ;;  %v326_v56 = vpack.c.b16 %v325_v55, %v325_v55 }
  0x91   :  { %v90_v12 = vpack.c.bf16 %v74_v11, %v74_v11  ;;  %v82_v29 = vmul.f32 0.25, %v74_v11 }
  0x93   :  { %v119_v13 = vunpack.c.l.b16 %v90_v12  ;;  %v86_v30 = vpack.c.bf16 %v82_v29, %v82_v29 }
  0x95   :  { %v797_v14 = vpack.c.b16 %v119_v13, %v119_v13  ;;  %v351_v57 = vunpack.c.l.b16 %v86_v30 }
  0x96   :  { %v76_v15 = vpop.f32.mrf.mxu0 }
  0x97   :  { %121 = vrot.lane.b32.xlu0 %v797_v14, %s741_s0  ;;  %v77_v16 = vadd.f32 %v706_v4, %v76_v15  ;;  %v352_v58 = vpack.c.b16 %v351_v57, %v351_v57 }
  0x99   :  { %v91_v17 = vpack.c.bf16 %v77_v16, %v77_v16  ;;  %v83_v39 = vmul.f32 0.25, %v77_v16 }
  0x9b   :  { %v143_v18 = vunpack.c.l.b16 %v91_v17  ;;  %v814_v40 = vpack.c.bf16 %v83_v39, %v83_v39 }
  0x9d   :  { %v800_v19 = vpack.c.b16 %v143_v18, %v143_v18 }
  0x9e   :  { %v78_v20 = vpop.f32.mrf.mxu0 }
  0x9f   :  { %96 = vrot.lane.b32.xlu0 %v793_v9, %s741_s0  ;;  %v79_v21 = vadd.f32 %v706_v4, %v78_v20  ;;  %145 = vrot.lane.b32.xlu1 %v800_v19, %s741_s0 }
  0xa1   :  { %v92_v22 = vpack.c.bf16 %v79_v21, %v79_v21  ;;  %v84_v41 = vmul.f32 0.25, %v79_v21 }
  0xa3   :  { %v167_v23 = vunpack.c.l.b16 %v92_v22  ;;  %v88_v42 = vpack.c.bf16 %v84_v41, %v84_v41 }
  0xa5   :  { %v804_v24 = vpack.c.b16 %v167_v23, %v167_v23  ;;  %v403_v59 = vunpack.c.l.b16 %v88_v42 }
  0xa7   :  { %169 = vrot.lane.b32.xlu1 %v804_v24, %s741_s0  ;;  %v404_v60 = vpack.c.b16 %v403_v59, %v403_v59 }
  0xe9   :  { %v240_v25 = vpop.permute.xlu2 %239 }
  0xea   :  { %v246_v26 = vsel %vm244_vm1, %v240_v25, 0 }
  0xeb   :  { %255 = vmatpush.bf16.msra.mxu2 %v246_v26 }
 0x109   :  { %v122_v27 = vpop.permute.xlu0 %121 }
 0x10a   :  { %v127_v28 = vsel %vm98_vm2, %v122_v27, 0  ;;  %v377_v27 = vunpack.c.l.b16 %v814_v40 }
 0x10b   :  { %136 = vmatpush.bf16.xpose.msra.mxu3 %v127_v28 }
 0x10c   :  { %v378_v28 = vpack.c.b16 %v377_v27, %v377_v27 }
 0x111   :  { %v97_v31 = vpop.permute.xlu0 %96  ;;  %v146_v32 = vpop.permute.xlu1 %145 }
 0x112   :  { %659 = vmatmul.msk.bf16.vlgmr.msra.gmra.mxu3 %vm98_vm2, %v86_v30  ;;  %v103_v33 = vsel %vm98_vm2, %v97_v31, 0  ;;  %v151_v34 = vsel %vm98_vm2, %v146_v32, 0 }
 0x113   :  { %112 = vmatpush.bf16.xpose.msra.mxu1 %v103_v33  ;;  %160 = vmatpush.bf16.xpose.msrb.mxu3 %v151_v34 }
 0x119   :  { %v170_v37 = vpop.permute.xlu1 %169 }
 0x11a   :  { %658 = vmatmul.msk.bf16.vlgmr.msra.gmra.mxu1 %vm98_vm2, %v85_v36  ;;  %v175_v38 = vsel %vm98_vm2, %v170_v37, 0 }
 0x11b   :  { %184 = vmatpush.bf16.xpose.msrb.mxu1 %v175_v38 }
 0x122   :  { %660 = vmatmul.msk.bf16.vlgmr.msrb.gmra.mxu3 %vm98_vm2, %v814_v40 }
 0x12a   :  { %661 = vmatmul.msk.bf16.vlgmr.msrb.gmra.mxu1 %vm98_vm2, %v88_v42 }
 0x195   :  { %v138_v43 = vpop.f32.mrf.mxu3 }
 0x196   :  { %v194_v48 = vsel %vm190_vm3, %v138_v43, -inf }
 0x197   :  { %v114_v44 = vpop.f32.mrf.mxu1 }
 0x198   :  { %v191_v45 = vsel %vm190_vm3, %v114_v44, -inf }
 0x199   :  { %192 = vmax.xlane.f32.xlu2 %v191_v45 }
 0x19d   :  { %v140_v46 = vpop.f32.mrf.mxu3 }
 0x19f   :  { %v116_v47 = vpop.f32.mrf.mxu1 }
 0x1a1   :  { %195 = vmax.xlane.f32.xlu2 %v194_v48 }
 0x1a5   :  { %v162_v49 = vpop.f32.mrf.mxu3 }
 0x1a6   :  { %v197_v50 = vsel %vm190_vm3, %v162_v49, -inf }
 0x1a7   :  { %198 = vmax.xlane.f32.xlu0 %v197_v50  ;;  %v186_v51 = vpop.f32.mrf.mxu1 }
 0x1a8   :  { %v200_v52 = vsel %vm190_vm3, %v186_v51, -inf }
 0x1a9   :  { %201 = vmax.xlane.f32.xlu1 %v200_v52 }
 0x1ad   :  { %v164_v53 = vpop.f32.mrf.mxu3 }
 0x1af   :  { %v188_v54 = vpop.f32.mrf.mxu1 }
 0x1b9   :  { %261 = vrot.lane.b32.xlu2 %v797_v14, %s740_s1 }
 0x1bb   :  { %329 = vrot.lane.b32.xlu0 %v793_v9, %s742_s2 }
 0x1c2   :  { %355 = vrot.lane.b32.xlu1 %v797_v14, %s742_s2 }
 0x1ca   :  { %327 = vrot.lane.b32.xlu1 %v326_v56, %s743_s28 }
 0x1d2   :  { %353 = vrot.lane.b32.xlu1 %v352_v58, %s743_s28 }
 0x1da   :  { %282 = vrot.lane.b32.xlu1 %v800_v19, %s740_s1 }
 0x1e2   :  { %381 = vrot.lane.b32.xlu1 %v800_v19, %s742_s2 }
 0x1ea   :  { %407 = vrot.lane.b32.xlu1 %v804_v24, %s742_s2 }
 0x1f2   :  { %405 = vrot.lane.b32.xlu1 %v404_v60, %s743_s28 }
 0x20c   :  { %v193_v61 = vpop.xlane.xlu2 %192 }
 0x20d   :  { %v203_v62 = vsub.f32 %v114_v44, %v193_v61 }
 0x20f   :  { %v207_v63 = vmul.f32 1.442695, %v203_v62 }
 0x211   :  { %708 = vpow2.f32 %v207_v63 }
 0x214   :  { %v196_v0 = vpop.xlane.xlu2 %195 }
 0x215   :  { %v204_v1 = vsub.f32 %v138_v43, %v196_v0 }
 0x217   :  { %v709_v2 = vpop.eup %708  ;;  %v209_v3 = vmul.f32 1.442695, %v204_v1 }
 0x218   :  { %v215_v4 = vsel %vm190_vm3, %v709_v2, 0.0 }
 0x219   :  { %710 = vpow2.f32 %v209_v3  ;;  %216 = vadd.xlane.f32.xlu2 %v215_v4 }
 0x21a   :  { %v199_v5 = vpop.xlane.xlu0 %198 }
 0x21b   :  { %v205_v6 = vsub.f32 %v162_v49, %v199_v5 }
 0x21c   :  { %v262_v7 = vpop.permute.xlu2 %261  ;;  %v202_v8 = vpop.xlane.xlu1 %201 }
 0x21d   :  { %v211_v10 = vmul.f32 1.442695, %v205_v6  ;;  %v267_v11 = vsel %vm244_vm1, %v262_v7, 0  ;;  %v206_v12 = vsub.f32 %v186_v51, %v202_v8 }
 0x21e   :  { %276 = vmatpush.bf16.msra.mxu3 %v267_v11 }
 0x21f   :  { %v711_v13 = vpop.eup %710  ;;  %712 = vpow2.f32 %v211_v10  ;;  %v213_v15 = vmul.f32 1.442695, %v206_v12 }
 0x220   :  { %v218_v16 = vsel %vm190_vm3, %v711_v13, 0.0 }
 0x221   :  { %714 = vpow2.f32 %v213_v15  ;;  %219 = vadd.xlane.f32.xlu2 %v218_v16 }
 0x225   :  { %v713_v17 = vpop.eup %712 }
 0x226   :  { %v221_v20 = vsel %vm190_vm3, %v713_v17, 0.0 }
 0x227   :  { %v715_v18 = vpop.eup %714 }
 0x228   :  { %v224_v21 = vsel %vm190_vm3, %v715_v18, 0.0 }
 0x229   :  { %222 = vadd.xlane.f32.xlu2 %v221_v20  ;;  %225 = vadd.xlane.f32.xlu0 %v224_v21 }
 0x22d   :  { %v330_v22 = vpop.permute.xlu0 %329 }
 0x22e   :  { %v335_v23 = vsel %vm98_vm2, %v330_v22, 0 }
 0x22f   :  { %344 = vmatpush.bf16.xpose.msrb.mxu2 %v335_v23 }
 0x234   :  { %v356_v25 = vpop.permute.xlu1 %355 }
 0x235   :  { %v361_v26 = vsel %vm98_vm2, %v356_v25, 0 }
 0x236   :  { %370 = vmatpush.bf16.xpose.msrb.mxu3 %v361_v26 }
 0x23c   :  { %v328_v29 = vpop.permute.xlu1 %327 }
 0x23d   :  { %379 = vrot.lane.b32.xlu0 %v378_v28, %s743_s28 }
 0x241   :  { %303 = vrot.lane.b32.xlu2 %v804_v24, %s740_s1 }
 0x244   :  { %v354_v30 = vpop.permute.xlu1 %353 }
 0x24c   :  { %v283_v31 = vpop.permute.xlu1 %282 }
 0x24d   :  { %v288_v32 = vsel %vm244_vm1, %v283_v31, 0 }
 0x24e   :  { %297 = vmatpush.bf16.msrb.mxu0 %v288_v32 }
 0x254   :  { %v382_v33 = vpop.permute.xlu1 %381 }
 0x255   :  { %v387_v34 = vsel %vm98_vm2, %v382_v33, 0 }
 0x256   :  { %396 = vmatpush.bf16.xpose.msra.mxu0 %v387_v34 }
 0x25c   :  { %v408_v46 = vpop.permute.xlu1 %407 }
 0x25d   :  { %v413_v52 = vsel %vm98_vm2, %v408_v46, 0 }
 0x264   :  { %v406_v56 = vpop.permute.xlu1 %405 }
 0x28c   :  { %v217_v35 = vpop.xlane.xlu2 %216 }
 0x28d   :  { %716 = vrcp.f32 %v217_v35 }
 0x293   :  { %v717_v36 = vpop.eup %716 }
 0x294   :  { %v220_v37 = vpop.xlane.xlu2 %219  ;;  %v231_v38 = vmul.f32 %v717_v36, %v709_v2 }
 0x295   :  { %718 = vrcp.f32 %v220_v37 }
 0x296   :  { %v235_v39 = vpack.c.bf16 %v231_v38, %v231_v38 }
 0x298   :  { %662 = vmatmul.msk.bf16.vlgmr.msra.gmra.mxu2 %vm190_vm3, %v235_v39 }
 0x29b   :  { %v719_v40 = vpop.eup %718 }
 0x29c   :  { %v232_v41 = vmul.f32 %v719_v40, %v711_v13  ;;  %v223_v42 = vpop.xlane.xlu2 %222  ;;  %v226_v43 = vpop.xlane.xlu0 %225 }
 0x29d   :  { %720 = vrcp.f32 %v223_v42 }
 0x29e   :  { %v236_v44 = vpack.c.bf16 %v232_v41, %v232_v41  ;;  %722 = vrcp.f32 %v226_v43 }
 0x2a0   :  { %663 = vmatmul.msk.bf16.vlgmr.msra.gmra.mxu3 %vm190_vm3, %v236_v44 }
 0x2a3   :  { %v721_v45 = vpop.eup %720 }
 0x2a4   :  { %v723_v47 = vpop.eup %722  ;;  %v233_v48 = vmul.f32 %v721_v45, %v713_v17  ;;  %v304_v49 = vpop.permute.xlu2 %303 }
 0x2a5   :  { %v234_v50 = vmul.f32 %v723_v47, %v715_v18  ;;  %v309_v51 = vsel %vm244_vm1, %v304_v49, 0 }
 0x2a6   :  { %318 = vmatpush.bf16.msra.mxu1 %v309_v51  ;;  %v237_v53 = vpack.c.bf16 %v233_v48, %v233_v48 }
 0x2a7   :  { %v238_v54 = vpack.c.bf16 %v234_v50, %v234_v50 }
 0x2a8   :  { %664 = vmatmul.msk.bf16.vlgmr.msrb.gmra.mxu0 %vm190_vm3, %v237_v53  ;;  %666 = vmatmul.msk.bf16.vlgmr.msrb.gmra.mxu2 %vm98_vm2, %v328_v29 }
 0x2a9   :  { %665 = vmatmul.msk.bf16.vlgmr.msra.gmra.mxu1 %vm190_vm3, %v238_v54 }
 0x2aa   :  { %422 = vmatpush.bf16.xpose.msrb.mxu1 %v413_v52 }
 0x2af   :  { %v380_v55 = vpop.permute.xlu0 %379 }
 0x2b0   :  { %667 = vmatmul.msk.bf16.vlgmr.msrb.gmra.mxu3 %vm98_vm2, %v354_v30 }
 0x2b8   :  { %668 = vmatmul.msk.bf16.vlgmr.msra.gmra.mxu0 %vm98_vm2, %v380_v55 }
 0x2b9   :  { %669 = vmatmul.msk.bf16.vlgmr.msrb.gmra.mxu1 %vm98_vm2, %v406_v56 }
 0x31b   :  { %v857_v57 = vpop.f32.mrf.mxu2 }
 0x323   :  { %v259_v58 = vpop.f32.mrf.mxu2  ;;  %v859_v59 = vpop.f32.mrf.mxu3 }
 0x324   :  { %v689_v58 = vld [vmem:[%s923_s3 + $0x8] sm:$0xff] }
 0x325   :  { %v861_v60 = vpop.f32.mrf.mxu0 }
 0x326   :  { %v863_v61 = vpop.f32.mrf.mxu1 }
 0x32b   :  { %v280_v62 = vpop.f32.mrf.mxu3  ;;  %v346_v63 = vpop.f32.mrf.mxu2 }
 0x32c   :  { %v428_v0 = vsel %vm190_vm3, %v346_v63, -inf }
 0x32d   :  { %429 = vmax.xlane.f32.xlu2 %v428_v0  ;;  %v301_v1 = vpop.f32.mrf.mxu0 }
 0x32e   :  { %v322_v2 = vpop.f32.mrf.mxu1 }
 0x333   :  { %v348_v3 = vpop.f32.mrf.mxu2  ;;  %v372_v4 = vpop.f32.mrf.mxu3 }
 0x334   :  { %v431_v5 = vsel %vm190_vm3, %v372_v4, -inf }
 0x335   :  { %432 = vmax.xlane.f32.xlu1 %v431_v5  ;;  %v398_v6 = vpop.f32.mrf.mxu0 }
 0x336   :  { %v424_v7 = vpop.f32.mrf.mxu1  ;;  %v434_v8 = vsel %vm190_vm3, %v398_v6, -inf }
 0x337   :  { %435 = vmax.xlane.f32.xlu0 %v434_v8  ;;  %v437_v10 = vsel %vm190_vm3, %v424_v7, -inf  ;;  %v688_v8 = vld [vmem:[%s923_s3] sm:$0xff] }
 0x338   :  { %438 = vmax.xlane.f32.xlu2 %v437_v10 }
 0x33b   :  { %v374_v11 = vpop.f32.mrf.mxu3 }
 0x33d   :  { %v400_v12 = vpop.f32.mrf.mxu0 }
 0x33e   :  { %v426_v13 = vpop.f32.mrf.mxu1 }
 0x34b   :  { %497 = vrot.lane.b32.xlu0 %v797_v14, %s744_s29 }
 0x353   :  { %518 = vrot.lane.b32.xlu0 %v800_v19, %s744_s29 }
 0x3a0   :  { %v430_v15 = vpop.xlane.xlu2 %429 }
 0x3a1   :  { %v440_v16 = vsub.f32 %v346_v63, %v430_v15 }
 0x3a3   :  { %v444_v17 = vmul.f32 1.442695, %v440_v16 }
 0x3a5   :  { %724 = vpow2.f32 %v444_v17 }
 0x3a8   :  { %v433_v18 = vpop.xlane.xlu1 %432 }
 0x3a9   :  { %v441_v20 = vsub.f32 %v372_v4, %v433_v18 }
 0x3aa   :  { %v436_v28 = vpop.xlane.xlu0 %435 }
 0x3ab   :  { %v725_v21 = vpop.eup %724  ;;  %v446_v22 = vmul.f32 1.442695, %v441_v20  ;;  %v439_v23 = vpop.xlane.xlu2 %438  ;;  %v442_v29 = vsub.f32 %v398_v6, %v436_v28 }
 0x3ac   :  { %v443_v25 = vsub.f32 %v424_v7, %v439_v23  ;;  %v452_v26 = vsel %vm190_vm3, %v725_v21, 0.0 }
 0x3ad   :  { %726 = vpow2.f32 %v446_v22  ;;  %453 = vadd.xlane.f32.xlu1 %v452_v26  ;;  %v448_v30 = vmul.f32 1.442695, %v442_v29 }
 0x3ae   :  { %v450_v27 = vmul.f32 1.442695, %v443_v25 }
 0x3b0   :  { %728 = vpow2.f32 %v450_v27 }
 0x3b1   :  { %730 = vpow2.f32 %v448_v30 }
 0x3b3   :  { %v727_v14 = vpop.eup %726 }
 0x3b4   :  { %v455_v19 = vsel %vm190_vm3, %v727_v14, 0.0 }
 0x3b5   :  { %456 = vadd.xlane.f32.xlu2 %v455_v19 }
 0x3b6   :  { %v729_v31 = vpop.eup %728 }
 0x3b7   :  { %v461_v32 = vsel %vm190_vm3, %v729_v31, 0.0  ;;  %v731_v35 = vpop.eup %730 }
 0x3b8   :  { %v458_v36 = vsel %vm190_vm3, %v731_v35, 0.0 }
 0x3bd   :  { %v498_v33 = vpop.permute.xlu0 %497  ;;  %462 = vadd.xlane.f32.xlu2 %v461_v32 }
 0x3be   :  { %v503_v34 = vsel %vm244_vm1, %v498_v33, 0 }
 0x3bf   :  { %512 = vmatpush.bf16.msra.mxu3 %v503_v34 }
 0x3c5   :  { %v519_v37 = vpop.permute.xlu0 %518  ;;  %459 = vadd.xlane.f32.xlu2 %v458_v36 }
 0x3c6   :  { %v524_v38 = vsel %vm244_vm1, %v519_v37, 0  ;;  %476 = vrot.lane.b32.xlu1 %v793_v9, %s744_s29 }
 0x3c7   :  { %533 = vmatpush.bf16.msrb.mxu0 %v524_v38 }
 0x3dd   :  { %539 = vrot.lane.b32.xlu2 %v804_v24, %s744_s29 }
 0x420   :  { %v454_v40 = vpop.xlane.xlu1 %453 }
 0x428   :  { %v457_v39 = vpop.xlane.xlu2 %456 }
 0x429   :  { %732 = vrcp.f32 %v457_v39 }
 0x42a   :  { %734 = vrcp.f32 %v454_v40 }
 0x42f   :  { %v733_v41 = vpop.eup %732 }
 0x430   :  { %v469_v42 = vmul.f32 %v733_v41, %v727_v14  ;;  %v463_v43 = vpop.xlane.xlu2 %462  ;;  %v735_v45 = vpop.eup %734 }
 0x431   :  { %736 = vrcp.f32 %v463_v43  ;;  %v468_v46 = vmul.f32 %v735_v45, %v725_v21 }
 0x432   :  { %v473_v44 = vpack.c.bf16 %v469_v42, %v469_v42 }
 0x433   :  { %v472_v24 = vpack.c.bf16 %v468_v46, %v468_v46 }
 0x434   :  { %671 = vmatmul.msk.bf16.vlgmr.msra.gmra.mxu3 %vm190_vm3, %v473_v44 }
 0x437   :  { %v737_v49 = vpop.eup %736 }
 0x438   :  { %v477_v47 = vpop.permute.xlu1 %476  ;;  %v460_v48 = vpop.xlane.xlu2 %459  ;;  %v471_v51 = vmul.f32 %v737_v49, %v729_v31 }
 0x439   :  { %v482_v9 = vsel %vm244_vm1, %v477_v47, 0  ;;  %738 = vrcp.f32 %v460_v48 }
 0x43a   :  { %491 = vmatpush.bf16.msra.mxu2 %v482_v9  ;;  %v475_v56 = vpack.c.bf16 %v471_v51, %v471_v51 }
 0x43d   :  { %670 = vmatmul.msk.bf16.vlgmr.msra.gmra.mxu2 %vm190_vm3, %v472_v24 }
 0x43e   :  { %614 = vmatpush.bf16.msrb.mxu2 %v689_v58 }
 0x43f   :  { %v739_v50 = vpop.eup %738 }
 0x440   :  { %v470_v52 = vmul.f32 %v739_v50, %v731_v35  ;;  %v540_v53 = vpop.permute.xlu2 %539 }
 0x441   :  { %v545_v54 = vsel %vm244_vm1, %v540_v53, 0 }
 0x442   :  { %v474_v55 = vpack.c.bf16 %v470_v52, %v470_v52  ;;  %554 = vmatpush.bf16.msra.mxu1 %v545_v54  ;;  %615 = vmatpush.bf16.msrb.mxu2 %v688_v8 }
 0x444   :  { %672 = vmatmul.msk.bf16.vlgmr.msrb.gmra.mxu0 %vm190_vm3, %v474_v55 }
 0x445   :  { %673 = vmatmul.msk.bf16.vlgmr.msra.gmra.mxu1 %vm190_vm3, %v475_v56 }
 0x4b7   :  { %v514_v62 = vpop.f32.mrf.mxu3 }
 0x4bf   :  { %v516_v63 = vpop.f32.mrf.mxu3 }
 0x4c0   :  { %v493_v0 = vpop.f32.mrf.mxu2 }
 0x4c1   :  { %v696_v1 = vpack.i.bf16 %v514_v62, %v493_v0  ;;  %v535_v2 = vpop.f32.mrf.mxu0 }
 0x4c2   :  { %v556_v3 = vpop.f32.mrf.mxu1 }
 0x4c3   :  { %v701_v4 = vpack.i.bf16 %v556_v3, %v535_v2  ;;  %697 = vrot.lane.b32.xlu1 %v696_v1, %s745_s7 }
 0x4c5   :  { %702 = vrot.lane.b32.xlu0 %v701_v4, %s745_s7 }
 0x4c8   :  { %v495_v5 = vpop.f32.mrf.mxu2 }
 0x4c9   :  { %v537_v6 = vpop.f32.mrf.mxu0 }
 0x4ca   :  { %v558_v7 = vpop.f32.mrf.mxu1 }
 0x535   :  { %v698_v10 = vpop.permute.xlu1 %697 }
 0x536   :  { %v700_v11 = vunpack.i.h.bf16 %v698_v10  ;;  %v699_v12 = vunpack.i.l.bf16 %v698_v10 }
 0x537   :  { %v703_v17 = vpop.permute.xlu0 %702 }
 0x538   :  { %v577_v13 = vsel %vm98_vm2, %v859_v59, %v700_v11  ;;  %v576_v15 = vsel %vm98_vm2, %v857_v57, %v699_v12  ;;  %v705_v18 = vunpack.i.h.bf16 %v703_v17  ;;  %v704_v20 = vunpack.i.l.bf16 %v703_v17  ;;  %v707_v59 = vld [vmem:[%s924_s4] ss:$0 sm:$0xff] }
 0x539   :  { %v580_v16 = vpack.c.bf16 %v577_v13, %v576_v15 }
 0x53a   :  { %v578_v21 = vsel %vm98_vm2, %v861_v60, %v704_v20  ;;  %v579_v22 = vsel %vm98_vm2, %v863_v61, %v705_v18 }
 0x53b   :  { %682 = vmatmul.msk.bf16.vlgmr.msrb.gmra.mxu2 %vm55_vm0, %v580_v16  ;;  %v581_v23 = vpack.c.bf16 %v579_v22, %v578_v21 }
 0x54b   :  { %683 = vmatmul.msk.bf16.gmra.mxu2 %vm55_vm0, %v581_v23 }
 0x5be   :  { %v617_v57 = vpop.f32.mrf.mxu2 }
 0x5bf   :  { %v618_v25 = vadd.f32 %v707_v59, %v617_v57 }
 0x5c1   :  { %v627_v26 = vpack.c.bf16 %v618_v25, %v618_v25 }
 0x5c3   :  { %632 = vst.msk [vmem:[%s925_s5] sm:$0xf] %vm631_vm4, %v627_v26 }
 0x5c6   :  { %v619_v27 = vpop.f32.mrf.mxu2 }
 0x5c7   :  { %v620_v60 = vadd.f32 %v707_v59, %v619_v27 }
 0x5c9   :  { %v628_v28 = vpack.c.bf16 %v620_v60, %v620_v60 }
 0x5cb   :  { %633 = vst.msk [vmem:[%s925_s5 + $0x4] sm:$0xf] %vm631_vm4, %v628_v28 }
 0x5ce   :  { %v622_v61 = vpop.f32.mrf.mxu2 }
 0x5cf   :  { %v623_v14 = vadd.f32 %v707_v59, %v622_v61 }
 0x5d1   :  { %v629_v29 = vpack.c.bf16 %v623_v14, %v623_v14 }
 0x5d3   :  { %634 = vst.msk [vmem:[%s925_s5 + $0x8] sm:$0xf] %vm631_vm4, %v629_v29 }
 0x5d6   :  { %v624_v19 = vpop.f32.mrf.mxu2 }
 0x5d7   :  { %v625_v30 = vadd.f32 %v707_v59, %v624_v19 }
 0x5d9   :  { %v630_v31 = vpack.c.bf16 %v625_v30, %v625_v30 }
 0x5db   :  { %635 = vst.msk [vmem:[%s925_s5 + $0xc] sm:$0xf] %vm631_vm4, %v630_v31 }

</bundles_post_ra>
